<compile_context>
chip_gen: v7x
topology: tpu7x:2x2x1
jax: 0.10.0
libtpu: 0.0.40
codegen_flags: <defaults>
</compile_context>

<pallas_src>
import functools

import jax
import jax.numpy as jnp
from jax import lax
from jax.experimental import pallas as pl
from jax.experimental.pallas import tpu as pltpu


def _mv_attn_kernel(x_ref, wqkv_ref, wpT_ref, bp_ref, o_ref,
                    qkv_scr, attn_scr, *, num_heads, scale):
    S = x_ref.shape[1]
    D = x_ref.shape[2]
    hd = D // num_heads

    x = x_ref[0]                                                      # (S, D)

    # Fused QKV projection: one wide MXU matmul, f32 accumulation.
    qkv_scr[...] = jnp.dot(x, wqkv_ref[...],
                           preferred_element_type=jnp.float32)        # (S, 3D)

    # Per-head attention (static unroll; heads/seq are tiny at these shapes).
    # NOTE: for much larger S (~2k+) tile the key axis flash-style instead of
    # materializing the (S, S) score matrix (v7x has only 64 MiB VMEM).
    for h in range(num_heads):
        q_h = qkv_scr[:, h * hd:(h + 1) * hd]                          # (S, hd)
        k_h = qkv_scr[:, D + h * hd:D + (h + 1) * hd]                  # (S, hd)
        v_h = qkv_scr[:, 2 * D + h * hd:2 * D + (h + 1) * hd]          # (S, hd)

        s = lax.dot_general(q_h, k_h, (((1,), (1,)), ((), ())),
                            preferred_element_type=jnp.float32) * scale   # (S, S)
        s = s - jnp.max(s, axis=-1, keepdims=True)
        p = jnp.exp(s)
        inv_l = pl.reciprocal(jnp.sum(p, axis=-1, keepdims=True), approx=True)
        o_h = jnp.dot(p, v_h, preferred_element_type=jnp.float32) * inv_l
        attn_scr[:, h * hd:(h + 1) * hd] = o_h                         # concat heads

    # Single fused output projection + bias.
    out = jnp.dot(attn_scr[...], wpT_ref[...],
                  preferred_element_type=jnp.float32)                  # (S, D)
    o_ref[0] = (out + bp_ref[...]).astype(o_ref.dtype)


def mv_attention(x, w_qkv, w_proj, b_proj, *, num_frames, num_heads,
                 param_dtype=jnp.float32):
    """MVAttention forward. x: (B*V, N, D)."""
    BV, N, D = x.shape
    assert BV % num_frames == 0 and D % num_heads == 0
    B = BV // num_frames
    S = num_frames * N
    hd = D // num_heads
    scale = hd ** -0.5

    # (b v) n d -> b (v n) d
    xg = x.reshape(B, S, D).astype(param_dtype)

    # PyTorch Linear: y = x @ W.T.  Keep fused (D, 3D)/(D, D) weights whole.
    wqkvT = jnp.asarray(w_qkv).T.astype(param_dtype)     # (D, 3D): [q|k|v], head-major
    wprojT = jnp.asarray(w_proj).T.astype(param_dtype)   # (D, D)
    bproj = jnp.asarray(b_proj).reshape(1, D).astype(jnp.float32)
    # TODO(synk): attn_drop / proj_drop have p=0.0 in this config -> identity; omitted.

    out = pl.pallas_call(
        functools.partial(_mv_attn_kernel, num_heads=num_heads, scale=scale),
        out_shape=jax.ShapeDtypeStruct((B, S, D), jnp.float32),
        grid_spec=pltpu.PrefetchScalarGridSpec(
            num_scalar_prefetch=0,
            grid=(B,),
            in_specs=[
                pl.BlockSpec((1, S, D), lambda b: (b, 0, 0)),     # x (per batch)
                pl.BlockSpec((D, 3 * D), lambda b: (0, 0)),       # Wqkv^T (resident)
                pl.BlockSpec((D, D), lambda b: (0, 0)),           # Wproj^T (resident)
                pl.BlockSpec((1, D), lambda b: (0, 0)),           # proj bias
            ],
            out_specs=pl.BlockSpec((1, S, D), lambda b: (b, 0, 0)),
            scratch_shapes=[
                pltpu.VMEM((S, 3 * D), jnp.float32),              # fused qkv
                pltpu.VMEM((S, D), jnp.float32),                  # concat head outputs
            ],
        ),
        compiler_params=pltpu.CompilerParams(
            dimension_semantics=("parallel",)),                   # v7x: 1 batch / TC
    )(xg, wqkvT, wprojT, bproj)

    # b (v n) d -> (b v) n d
    return out.reshape(BV, N, D)


def ref_mv_attention(x, w_qkv, w_proj, b_proj, *, num_frames, num_heads):
    BV, N, D = x.shape
    B = BV // num_frames
    S = num_frames * N
    hd = D // num_heads
    scale = hd ** -0.5
    xg = x.reshape(B, S, D)
    qkv = xg @ w_qkv.T                                          # (B, S, 3D)
    qkv = qkv.reshape(B, S, 3, num_heads, hd).transpose(2, 0, 3, 1, 4)
    q, k, v = qkv[0], qkv[1], qkv[2]                            # (B, H, S, hd)
    attn = jnp.einsum('bhqd,bhkd->bhqk', q, k) * scale
    attn = jax.nn.softmax(attn, axis=-1)
    out = jnp.einsum('bhqk,bhkd->bhqd', attn, v)
    out = out.transpose(0, 2, 1, 3).reshape(B, S, D)
    out = out @ w_proj.T + b_proj
    return out.reshape(BV, N, D)


if __name__ == "__main__":
    # Module config: dim=64, num_heads=8, num_frames=4, qkv_bias=False
    dim, num_heads, num_frames = 64, 8, 4
    B, N = 2, 8                     # x: (B*V, N, D) = (8, 8, 64)

    key = jax.random.PRNGKey(0)
    k_x, k_qkv, k_proj, k_bias = jax.random.split(key, 4)

    x = jax.random.normal(k_x, (B * num_frames, N, dim), dtype=jnp.float32)
    # deterministic synthetic parameters (PyTorch Linear weight layout: (out, in))
    w_qkv = 0.02 * jax.random.normal(k_qkv, (3 * dim, dim), dtype=jnp.float32)
    w_proj = 0.02 * jax.random.normal(k_proj, (dim, dim), dtype=jnp.float32)
    b_proj = 0.02 * jax.random.normal(k_bias, (dim,), dtype=jnp.float32)

    ref = ref_mv_attention(x, w_qkv, w_proj, b_proj,
                           num_frames=num_frames, num_heads=num_heads)

    # f32 path (all generations).
    out = mv_attention(x, w_qkv, w_proj, b_proj,
                       num_frames=num_frames, num_heads=num_heads)
    out = jax.block_until_ready(out)
    assert out.shape == (B * num_frames, N, dim)
    # tolerance covers the EUP approximate-reciprocal softmax denominator
    assert jnp.allclose(out, ref, atol=1e-3, rtol=1e-3), \
        f"f32 max err {jnp.max(jnp.abs(out - ref))}"

    # bf16 input/weight path (MXU-native on v6e/v7x; accumulation stays f32).
    out_bf16 = mv_attention(x, w_qkv, w_proj, b_proj,
                            num_frames=num_frames, num_heads=num_heads,
                            param_dtype=jnp.bfloat16)
    out_bf16 = jax.block_until_ready(out_bf16)
    assert jnp.allclose(out_bf16, ref, atol=1e-2, rtol=1e-2), \
        f"bf16 max err {jnp.max(jnp.abs(out_bf16 - ref))}"

    print("KERNEL_OK")
</pallas_src>

<mosaic_0001>
module attributes {stable_mosaic.version = 11 : i64} {
  func.func @_mv_attn_kernel(%arg0: i32, %arg1: memref<1x32x64xf32, #tpu.memory_space<vmem>>, %arg2: memref<64x192xf32, #tpu.memory_space<vmem>>, %arg3: memref<64x64xf32, #tpu.memory_space<vmem>>, %arg4: memref<1x64xf32, #tpu.memory_space<vmem>>, %arg5: memref<1x32x64xf32, #tpu.memory_space<vmem>>, %arg6: memref<32x192xf32, #tpu.memory_space<vmem>>, %arg7: memref<32x64xf32, #tpu.memory_space<vmem>>) attributes {dimension_semantics = [#tpu.dimension_semantics<parallel>], iteration_bounds = array<i64: 2>, scalar_prefetch = 0 : i64, scratch_operands = 2 : i64, tpu.core_type = #tpu.core_type<tc>, window_params = [{transform_indices = @transform_0, window_bounds = array<i64: 1, 32, 64>}, {pipeline_mode = #tpu.pipeline_mode<synchronous>, transform_indices = @transform_1, window_bounds = array<i64: 64, 192>}, {pipeline_mode = #tpu.pipeline_mode<synchronous>, transform_indices = @transform_2, window_bounds = array<i64: 64, 64>}, {pipeline_mode = #tpu.pipeline_mode<synchronous>, transform_indices = @transform_3, window_bounds = array<i64: 1, 64>}, {transform_indices = @transform_4, window_bounds = array<i64: 1, 32, 64>}]} {
    %c0 = arith.constant 0 : index
    %c0_0 = arith.constant 0 : index
    %c0_1 = arith.constant 0 : index
    %0 = vector.load %arg1[%c0, %c0_0, %c0_1] : memref<1x32x64xf32, #tpu.memory_space<vmem>>, vector<1x32x64xf32>
    %1 = vector.shape_cast %0 : vector<1x32x64xf32> to vector<32x64xf32>
    %c0_2 = arith.constant 0 : index
    %c0_3 = arith.constant 0 : index
    %2 = vector.load %arg2[%c0_2, %c0_3] : memref<64x192xf32, #tpu.memory_space<vmem>>, vector<64x192xf32>
    %cst = arith.constant dense<0.000000e+00> : vector<32x192xf32>
    %3 = tpu.matmul %1, %2, %cst {dimension_numbers = #tpu.dot_dimension_numbers<[1], [0], [0], [1], [0, 0, 1, 1], [], []>} : vector<32x64xf32>, vector<64x192xf32>, vector<32x192xf32> -> vector<32x192xf32>
    %c0_4 = arith.constant 0 : index
    %c0_5 = arith.constant 0 : index
    %4 = vector.load %arg6[%c0_4, %c0_5] : memref<32x192xf32, #tpu.memory_space<vmem>>, vector<32x192xf32>
    tpu.vector_store %arg6[%c0_4, %c0_5], %3 {strides = array<i32>} : memref<32x192xf32, #tpu.memory_space<vmem>>, vector<32x192xf32>,
    %c0_6 = arith.constant 0 : index
    %c0_7 = arith.constant 0 : index
    %5 = vector.load %arg6[%c0_6, %c0_7] : memref<32x192xf32, #tpu.memory_space<vmem>>, vector<32x8xf32>
    %c0_8 = arith.constant 0 : index
    %c64 = arith.constant 64 : index
    %6 = vector.load %arg6[%c0_8, %c64] : memref<32x192xf32, #tpu.memory_space<vmem>>, vector<32x8xf32>
    %c0_9 = arith.constant 0 : index
    %c128 = arith.constant 128 : index
    %7 = vector.load %arg6[%c0_9, %c128] : memref<32x192xf32, #tpu.memory_space<vmem>>, vector<32x8xf32>
    %cst_10 = arith.constant dense<0.000000e+00> : vector<32x32xf32>
    %8 = tpu.matmul %5, %6, %cst_10 {dimension_numbers = #tpu.dot_dimension_numbers<[1], [1], [0], [0], [0, 0, 1, 0], [], []>} : vector<32x8xf32>, vector<32x8xf32>, vector<32x32xf32> -> vector<32x32xf32>
    %cst_11 = arith.constant 0.353553385 : f32
    %9 = vector.broadcast %cst_11 : f32 to vector<32x32xf32>
    %10 = arith.mulf %8, %9 : vector<32x32xf32>
    %cst_12 = arith.constant dense<0xFF800000> : vector<32xf32>
    %11 = vector.multi_reduction <maximumf>, %10, %cst_12 [1] : vector<32x32xf32> to vector<32xf32>
    %12 = vector.shape_cast %11 : vector<32xf32> to vector<32x1xf32>
    %13 = vector.broadcast %12 : vector<32x1xf32> to vector<32x32xf32>
    %14 = arith.subf %10, %13 : vector<32x32xf32>
    %15 = math.exp %14 : vector<32x32xf32>
    %cst_13 = arith.constant dense<0.000000e+00> : vector<32xf32>
    %16 = vector.multi_reduction <add>, %15, %cst_13 [1] : vector<32x32xf32> to vector<32xf32>
    %17 = vector.shape_cast %16 : vector<32xf32> to vector<32x1xf32>
    %18 = tpu.reciprocal %17 {approx = true} : vector<32x1xf32> -> vector<32x1xf32>
    %cst_14 = arith.constant dense<0.000000e+00> : vector<32x8xf32>
    %19 = tpu.matmul %15, %7, %cst_14 {dimension_numbers = #tpu.dot_dimension_numbers<[1], [0], [0], [1], [0, 0, 1, 1], [], []>} : vector<32x32xf32>, vector<32x8xf32>, vector<32x8xf32> -> vector<32x8xf32>
    %20 = vector.broadcast %18 : vector<32x1xf32> to vector<32x8xf32>
    %21 = arith.mulf %19, %20 : vector<32x8xf32>
    %c0_15 = arith.constant 0 : index
    %c0_16 = arith.constant 0 : index
    %22 = vector.load %arg7[%c0_15, %c0_16] : memref<32x64xf32, #tpu.memory_space<vmem>>, vector<32x8xf32>
    tpu.vector_store %arg7[%c0_15, %c0_16], %21 {strides = array<i32>} : memref<32x64xf32, #tpu.memory_space<vmem>>, vector<32x8xf32>,
    %c0_17 = arith.constant 0 : index
    %c8 = arith.constant 8 : index
    %23 = vector.load %arg6[%c0_17, %c8] : memref<32x192xf32, #tpu.memory_space<vmem>>, vector<32x8xf32>
    %c0_18 = arith.constant 0 : index
    %c72 = arith.constant 72 : index
    %24 = vector.load %arg6[%c0_18, %c72] : memref<32x192xf32, #tpu.memory_space<vmem>>, vector<32x8xf32>
    %c0_19 = arith.constant 0 : index
    %c136 = arith.constant 136 : index
    %25 = vector.load %arg6[%c0_19, %c136] : memref<32x192xf32, #tpu.memory_space<vmem>>, vector<32x8xf32>
    %cst_20 = arith.constant dense<0.000000e+00> : vector<32x32xf32>
    %26 = tpu.matmul %23, %24, %cst_20 {dimension_numbers = #tpu.dot_dimension_numbers<[1], [1], [0], [0], [0, 0, 1, 0], [], []>} : vector<32x8xf32>, vector<32x8xf32>, vector<32x32xf32> -> vector<32x32xf32>
    %cst_21 = arith.constant 0.353553385 : f32
    %27 = vector.broadcast %cst_21 : f32 to vector<32x32xf32>
    %28 = arith.mulf %26, %27 : vector<32x32xf32>
    %cst_22 = arith.constant dense<0xFF800000> : vector<32xf32>
    %29 = vector.multi_reduction <maximumf>, %28, %cst_22 [1] : vector<32x32xf32> to vector<32xf32>
    %30 = vector.shape_cast %29 : vector<32xf32> to vector<32x1xf32>
    %31 = vector.broadcast %30 : vector<32x1xf32> to vector<32x32xf32>
    %32 = arith.subf %28, %31 : vector<32x32xf32>
    %33 = math.exp %32 : vector<32x32xf32>
    %cst_23 = arith.constant dense<0.000000e+00> : vector<32xf32>
    %34 = vector.multi_reduction <add>, %33, %cst_23 [1] : vector<32x32xf32> to vector<32xf32>
    %35 = vector.shape_cast %34 : vector<32xf32> to vector<32x1xf32>
    %36 = tpu.reciprocal %35 {approx = true} : vector<32x1xf32> -> vector<32x1xf32>
    %cst_24 = arith.constant dense<0.000000e+00> : vector<32x8xf32>
    %37 = tpu.matmul %33, %25, %cst_24 {dimension_numbers = #tpu.dot_dimension_numbers<[1], [0], [0], [1], [0, 0, 1, 1], [], []>} : vector<32x32xf32>, vector<32x8xf32>, vector<32x8xf32> -> vector<32x8xf32>
    %38 = vector.broadcast %36 : vector<32x1xf32> to vector<32x8xf32>
    %39 = arith.mulf %37, %38 : vector<32x8xf32>
    %c0_25 = arith.constant 0 : index
    %c8_26 = arith.constant 8 : index
    %40 = vector.load %arg7[%c0_25, %c8_26] : memref<32x64xf32, #tpu.memory_space<vmem>>, vector<32x8xf32>
    tpu.vector_store %arg7[%c0_25, %c8_26], %39 {strides = array<i32>} : memref<32x64xf32, #tpu.memory_space<vmem>>, vector<32x8xf32>,
    %c0_27 = arith.constant 0 : index
    %c16 = arith.constant 16 : index
    %41 = vector.load %arg6[%c0_27, %c16] : memref<32x192xf32, #tpu.memory_space<vmem>>, vector<32x8xf32>
    %c0_28 = arith.constant 0 : index
    %c80 = arith.constant 80 : index
    %42 = vector.load %arg6[%c0_28, %c80] : memref<32x192xf32, #tpu.memory_space<vmem>>, vector<32x8xf32>
    %c0_29 = arith.constant 0 : index
    %c144 = arith.constant 144 : index
    %43 = vector.load %arg6[%c0_29, %c144] : memref<32x192xf32, #tpu.memory_space<vmem>>, vector<32x8xf32>
    %cst_30 = arith.constant dense<0.000000e+00> : vector<32x32xf32>
    %44 = tpu.matmul %41, %42, %cst_30 {dimension_numbers = #tpu.dot_dimension_numbers<[1], [1], [0], [0], [0, 0, 1, 0], [], []>} : vector<32x8xf32>, vector<32x8xf32>, vector<32x32xf32> -> vector<32x32xf32>
    %cst_31 = arith.constant 0.353553385 : f32
    %45 = vector.broadcast %cst_31 : f32 to vector<32x32xf32>
    %46 = arith.mulf %44, %45 : vector<32x32xf32>
    %cst_32 = arith.constant dense<0xFF800000> : vector<32xf32>
    %47 = vector.multi_reduction <maximumf>, %46, %cst_32 [1] : vector<32x32xf32> to vector<32xf32>
    %48 = vector.shape_cast %47 : vector<32xf32> to vector<32x1xf32>
    %49 = vector.broadcast %48 : vector<32x1xf32> to vector<32x32xf32>
    %50 = arith.subf %46, %49 : vector<32x32xf32>
    %51 = math.exp %50 : vector<32x32xf32>
    %cst_33 = arith.constant dense<0.000000e+00> : vector<32xf32>
    %52 = vector.multi_reduction <add>, %51, %cst_33 [1] : vector<32x32xf32> to vector<32xf32>
    %53 = vector.shape_cast %52 : vector<32xf32> to vector<32x1xf32>
    %54 = tpu.reciprocal %53 {approx = true} : vector<32x1xf32> -> vector<32x1xf32>
    %cst_34 = arith.constant dense<0.000000e+00> : vector<32x8xf32>
    %55 = tpu.matmul %51, %43, %cst_34 {dimension_numbers = #tpu.dot_dimension_numbers<[1], [0], [0], [1], [0, 0, 1, 1], [], []>} : vector<32x32xf32>, vector<32x8xf32>, vector<32x8xf32> -> vector<32x8xf32>
    %56 = vector.broadcast %54 : vector<32x1xf32> to vector<32x8xf32>
    %57 = arith.mulf %55, %56 : vector<32x8xf32>
    %c0_35 = arith.constant 0 : index
    %c16_36 = arith.constant 16 : index
    %58 = vector.load %arg7[%c0_35, %c16_36] : memref<32x64xf32, #tpu.memory_space<vmem>>, vector<32x8xf32>
    tpu.vector_store %arg7[%c0_35, %c16_36], %57 {strides = array<i32>} : memref<32x64xf32, #tpu.memory_space<vmem>>, vector<32x8xf32>,
    %c0_37 = arith.constant 0 : index
    %c24 = arith.constant 24 : index
    %59 = vector.load %arg6[%c0_37, %c24] : memref<32x192xf32, #tpu.memory_space<vmem>>, vector<32x8xf32>
    %c0_38 = arith.constant 0 : index
    %c88 = arith.constant 88 : index
    %60 = vector.load %arg6[%c0_38, %c88] : memref<32x192xf32, #tpu.memory_space<vmem>>, vector<32x8xf32>
    %c0_39 = arith.constant 0 : index
    %c152 = arith.constant 152 : index
    %61 = vector.load %arg6[%c0_39, %c152] : memref<32x192xf32, #tpu.memory_space<vmem>>, vector<32x8xf32>
    %cst_40 = arith.constant dense<0.000000e+00> : vector<32x32xf32>
    %62 = tpu.matmul %59, %60, %cst_40 {dimension_numbers = #tpu.dot_dimension_numbers<[1], [1], [0], [0], [0, 0, 1, 0], [], []>} : vector<32x8xf32>, vector<32x8xf32>, vector<32x32xf32> -> vector<32x32xf32>
    %cst_41 = arith.constant 0.353553385 : f32
    %63 = vector.broadcast %cst_41 : f32 to vector<32x32xf32>
    %64 = arith.mulf %62, %63 : vector<32x32xf32>
    %cst_42 = arith.constant dense<0xFF800000> : vector<32xf32>
    %65 = vector.multi_reduction <maximumf>, %64, %cst_42 [1] : vector<32x32xf32> to vector<32xf32>
    %66 = vector.shape_cast %65 : vector<32xf32> to vector<32x1xf32>
    %67 = vector.broadcast %66 : vector<32x1xf32> to vector<32x32xf32>
    %68 = arith.subf %64, %67 : vector<32x32xf32>
    %69 = math.exp %68 : vector<32x32xf32>
    %cst_43 = arith.constant dense<0.000000e+00> : vector<32xf32>
    %70 = vector.multi_reduction <add>, %69, %cst_43 [1] : vector<32x32xf32> to vector<32xf32>
    %71 = vector.shape_cast %70 : vector<32xf32> to vector<32x1xf32>
    %72 = tpu.reciprocal %71 {approx = true} : vector<32x1xf32> -> vector<32x1xf32>
    %cst_44 = arith.constant dense<0.000000e+00> : vector<32x8xf32>
    %73 = tpu.matmul %69, %61, %cst_44 {dimension_numbers = #tpu.dot_dimension_numbers<[1], [0], [0], [1], [0, 0, 1, 1], [], []>} : vector<32x32xf32>, vector<32x8xf32>, vector<32x8xf32> -> vector<32x8xf32>
    %74 = vector.broadcast %72 : vector<32x1xf32> to vector<32x8xf32>
    %75 = arith.mulf %73, %74 : vector<32x8xf32>
    %c0_45 = arith.constant 0 : index
    %c24_46 = arith.constant 24 : index
    %76 = vector.load %arg7[%c0_45, %c24_46] : memref<32x64xf32, #tpu.memory_space<vmem>>, vector<32x8xf32>
    tpu.vector_store %arg7[%c0_45, %c24_46], %75 {strides = array<i32>} : memref<32x64xf32, #tpu.memory_space<vmem>>, vector<32x8xf32>,
    %c0_47 = arith.constant 0 : index
    %c32 = arith.constant 32 : index
    %77 = vector.load %arg6[%c0_47, %c32] : memref<32x192xf32, #tpu.memory_space<vmem>>, vector<32x8xf32>
    %c0_48 = arith.constant 0 : index
    %c96 = arith.constant 96 : index
    %78 = vector.load %arg6[%c0_48, %c96] : memref<32x192xf32, #tpu.memory_space<vmem>>, vector<32x8xf32>
    %c0_49 = arith.constant 0 : index
    %c160 = arith.constant 160 : index
    %79 = vector.load %arg6[%c0_49, %c160] : memref<32x192xf32, #tpu.memory_space<vmem>>, vector<32x8xf32>
    %cst_50 = arith.constant dense<0.000000e+00> : vector<32x32xf32>
    %80 = tpu.matmul %77, %78, %cst_50 {dimension_numbers = #tpu.dot_dimension_numbers<[1], [1], [0], [0], [0, 0, 1, 0], [], []>} : vector<32x8xf32>, vector<32x8xf32>, vector<32x32xf32> -> vector<32x32xf32>
    %cst_51 = arith.constant 0.353553385 : f32
    %81 = vector.broadcast %cst_51 : f32 to vector<32x32xf32>
    %82 = arith.mulf %80, %81 : vector<32x32xf32>
    %cst_52 = arith.constant dense<0xFF800000> : vector<32xf32>
    %83 = vector.multi_reduction <maximumf>, %82, %cst_52 [1] : vector<32x32xf32> to vector<32xf32>
    %84 = vector.shape_cast %83 : vector<32xf32> to vector<32x1xf32>
    %85 = vector.broadcast %84 : vector<32x1xf32> to vector<32x32xf32>
    %86 = arith.subf %82, %85 : vector<32x32xf32>
    %87 = math.exp %86 : vector<32x32xf32>
    %cst_53 = arith.constant dense<0.000000e+00> : vector<32xf32>
    %88 = vector.multi_reduction <add>, %87, %cst_53 [1] : vector<32x32xf32> to vector<32xf32>
    %89 = vector.shape_cast %88 : vector<32xf32> to vector<32x1xf32>
    %90 = tpu.reciprocal %89 {approx = true} : vector<32x1xf32> -> vector<32x1xf32>
    %cst_54 = arith.constant dense<0.000000e+00> : vector<32x8xf32>
    %91 = tpu.matmul %87, %79, %cst_54 {dimension_numbers = #tpu.dot_dimension_numbers<[1], [0], [0], [1], [0, 0, 1, 1], [], []>} : vector<32x32xf32>, vector<32x8xf32>, vector<32x8xf32> -> vector<32x8xf32>
    %92 = vector.broadcast %90 : vector<32x1xf32> to vector<32x8xf32>
    %93 = arith.mulf %91, %92 : vector<32x8xf32>
    %c0_55 = arith.constant 0 : index
    %c32_56 = arith.constant 32 : index
    %94 = vector.load %arg7[%c0_55, %c32_56] : memref<32x64xf32, #tpu.memory_space<vmem>>, vector<32x8xf32>
    tpu.vector_store %arg7[%c0_55, %c32_56], %93 {strides = array<i32>} : memref<32x64xf32, #tpu.memory_space<vmem>>, vector<32x8xf32>,
    %c0_57 = arith.constant 0 : index
    %c40 = arith.constant 40 : index
    %95 = vector.load %arg6[%c0_57, %c40] : memref<32x192xf32, #tpu.memory_space<vmem>>, vector<32x8xf32>
    %c0_58 = arith.constant 0 : index
    %c104 = arith.constant 104 : index
    %96 = vector.load %arg6[%c0_58, %c104] : memref<32x192xf32, #tpu.memory_space<vmem>>, vector<32x8xf32>
    %c0_59 = arith.constant 0 : index
    %c168 = arith.constant 168 : index
    %97 = vector.load %arg6[%c0_59, %c168] : memref<32x192xf32, #tpu.memory_space<vmem>>, vector<32x8xf32>
    %cst_60 = arith.constant dense<0.000000e+00> : vector<32x32xf32>
    %98 = tpu.matmul %95, %96, %cst_60 {dimension_numbers = #tpu.dot_dimension_numbers<[1], [1], [0], [0], [0, 0, 1, 0], [], []>} : vector<32x8xf32>, vector<32x8xf32>, vector<32x32xf32> -> vector<32x32xf32>
    %cst_61 = arith.constant 0.353553385 : f32
    %99 = vector.broadcast %cst_61 : f32 to vector<32x32xf32>
    %100 = arith.mulf %98, %99 : vector<32x32xf32>
    %cst_62 = arith.constant dense<0xFF800000> : vector<32xf32>
    %101 = vector.multi_reduction <maximumf>, %100, %cst_62 [1] : vector<32x32xf32> to vector<32xf32>
    %102 = vector.shape_cast %101 : vector<32xf32> to vector<32x1xf32>
    %103 = vector.broadcast %102 : vector<32x1xf32> to vector<32x32xf32>
    %104 = arith.subf %100, %103 : vector<32x32xf32>
    %105 = math.exp %104 : vector<32x32xf32>
    %cst_63 = arith.constant dense<0.000000e+00> : vector<32xf32>
    %106 = vector.multi_reduction <add>, %105, %cst_63 [1] : vector<32x32xf32> to vector<32xf32>
    %107 = vector.shape_cast %106 : vector<32xf32> to vector<32x1xf32>
    %108 = tpu.reciprocal %107 {approx = true} : vector<32x1xf32> -> vector<32x1xf32>
    %cst_64 = arith.constant dense<0.000000e+00> : vector<32x8xf32>
    %109 = tpu.matmul %105, %97, %cst_64 {dimension_numbers = #tpu.dot_dimension_numbers<[1], [0], [0], [1], [0, 0, 1, 1], [], []>} : vector<32x32xf32>, vector<32x8xf32>, vector<32x8xf32> -> vector<32x8xf32>
    %110 = vector.broadcast %108 : vector<32x1xf32> to vector<32x8xf32>
    %111 = arith.mulf %109, %110 : vector<32x8xf32>
    %c0_65 = arith.constant 0 : index
    %c40_66 = arith.constant 40 : index
    %112 = vector.load %arg7[%c0_65, %c40_66] : memref<32x64xf32, #tpu.memory_space<vmem>>, vector<32x8xf32>
    tpu.vector_store %arg7[%c0_65, %c40_66], %111 {strides = array<i32>} : memref<32x64xf32, #tpu.memory_space<vmem>>, vector<32x8xf32>,
    %c0_67 = arith.constant 0 : index
    %c48 = arith.constant 48 : index
    %113 = vector.load %arg6[%c0_67, %c48] : memref<32x192xf32, #tpu.memory_space<vmem>>, vector<32x8xf32>
    %c0_68 = arith.constant 0 : index
    %c112 = arith.constant 112 : index
    %114 = vector.load %arg6[%c0_68, %c112] : memref<32x192xf32, #tpu.memory_space<vmem>>, vector<32x8xf32>
    %c0_69 = arith.constant 0 : index
    %c176 = arith.constant 176 : index
    %115 = vector.load %arg6[%c0_69, %c176] : memref<32x192xf32, #tpu.memory_space<vmem>>, vector<32x8xf32>
    %cst_70 = arith.constant dense<0.000000e+00> : vector<32x32xf32>
    %116 = tpu.matmul %113, %114, %cst_70 {dimension_numbers = #tpu.dot_dimension_numbers<[1], [1], [0], [0], [0, 0, 1, 0], [], []>} : vector<32x8xf32>, vector<32x8xf32>, vector<32x32xf32> -> vector<32x32xf32>
    %cst_71 = arith.constant 0.353553385 : f32
    %117 = vector.broadcast %cst_71 : f32 to vector<32x32xf32>
    %118 = arith.mulf %116, %117 : vector<32x32xf32>
    %cst_72 = arith.constant dense<0xFF800000> : vector<32xf32>
    %119 = vector.multi_reduction <maximumf>, %118, %cst_72 [1] : vector<32x32xf32> to vector<32xf32>
    %120 = vector.shape_cast %119 : vector<32xf32> to vector<32x1xf32>
    %121 = vector.broadcast %120 : vector<32x1xf32> to vector<32x32xf32>
    %122 = arith.subf %118, %121 : vector<32x32xf32>
    %123 = math.exp %122 : vector<32x32xf32>
    %cst_73 = arith.constant dense<0.000000e+00> : vector<32xf32>
    %124 = vector.multi_reduction <add>, %123, %cst_73 [1] : vector<32x32xf32> to vector<32xf32>
    %125 = vector.shape_cast %124 : vector<32xf32> to vector<32x1xf32>
    %126 = tpu.reciprocal %125 {approx = true} : vector<32x1xf32> -> vector<32x1xf32>
    %cst_74 = arith.constant dense<0.000000e+00> : vector<32x8xf32>
    %127 = tpu.matmul %123, %115, %cst_74 {dimension_numbers = #tpu.dot_dimension_numbers<[1], [0], [0], [1], [0, 0, 1, 1], [], []>} : vector<32x32xf32>, vector<32x8xf32>, vector<32x8xf32> -> vector<32x8xf32>
    %128 = vector.broadcast %126 : vector<32x1xf32> to vector<32x8xf32>
    %129 = arith.mulf %127, %128 : vector<32x8xf32>
    %c0_75 = arith.constant 0 : index
    %c48_76 = arith.constant 48 : index
    %130 = vector.load %arg7[%c0_75, %c48_76] : memref<32x64xf32, #tpu.memory_space<vmem>>, vector<32x8xf32>
    tpu.vector_store %arg7[%c0_75, %c48_76], %129 {strides = array<i32>} : memref<32x64xf32, #tpu.memory_space<vmem>>, vector<32x8xf32>,
    %c0_77 = arith.constant 0 : index
    %c56 = arith.constant 56 : index
    %131 = vector.load %arg6[%c0_77, %c56] : memref<32x192xf32, #tpu.memory_space<vmem>>, vector<32x8xf32>
    %c0_78 = arith.constant 0 : index
    %c120 = arith.constant 120 : index
    %132 = vector.load %arg6[%c0_78, %c120] : memref<32x192xf32, #tpu.memory_space<vmem>>, vector<32x8xf32>
    %c0_79 = arith.constant 0 : index
    %c184 = arith.constant 184 : index
    %133 = vector.load %arg6[%c0_79, %c184] : memref<32x192xf32, #tpu.memory_space<vmem>>, vector<32x8xf32>
    %cst_80 = arith.constant dense<0.000000e+00> : vector<32x32xf32>
    %134 = tpu.matmul %131, %132, %cst_80 {dimension_numbers = #tpu.dot_dimension_numbers<[1], [1], [0], [0], [0, 0, 1, 0], [], []>} : vector<32x8xf32>, vector<32x8xf32>, vector<32x32xf32> -> vector<32x32xf32>
    %cst_81 = arith.constant 0.353553385 : f32
    %135 = vector.broadcast %cst_81 : f32 to vector<32x32xf32>
    %136 = arith.mulf %134, %135 : vector<32x32xf32>
    %cst_82 = arith.constant dense<0xFF800000> : vector<32xf32>
    %137 = vector.multi_reduction <maximumf>, %136, %cst_82 [1] : vector<32x32xf32> to vector<32xf32>
    %138 = vector.shape_cast %137 : vector<32xf32> to vector<32x1xf32>
    %139 = vector.broadcast %138 : vector<32x1xf32> to vector<32x32xf32>
    %140 = arith.subf %136, %139 : vector<32x32xf32>
    %141 = math.exp %140 : vector<32x32xf32>
    %cst_83 = arith.constant dense<0.000000e+00> : vector<32xf32>
    %142 = vector.multi_reduction <add>, %141, %cst_83 [1] : vector<32x32xf32> to vector<32xf32>
    %143 = vector.shape_cast %142 : vector<32xf32> to vector<32x1xf32>
    %144 = tpu.reciprocal %143 {approx = true} : vector<32x1xf32> -> vector<32x1xf32>
    %cst_84 = arith.constant dense<0.000000e+00> : vector<32x8xf32>
    %145 = tpu.matmul %141, %133, %cst_84 {dimension_numbers = #tpu.dot_dimension_numbers<[1], [0], [0], [1], [0, 0, 1, 1], [], []>} : vector<32x32xf32>, vector<32x8xf32>, vector<32x8xf32> -> vector<32x8xf32>
    %146 = vector.broadcast %144 : vector<32x1xf32> to vector<32x8xf32>
    %147 = arith.mulf %145, %146 : vector<32x8xf32>
    %c0_85 = arith.constant 0 : index
    %c56_86 = arith.constant 56 : index
    %148 = vector.load %arg7[%c0_85, %c56_86] : memref<32x64xf32, #tpu.memory_space<vmem>>, vector<32x8xf32>
    tpu.vector_store %arg7[%c0_85, %c56_86], %147 {strides = array<i32>} : memref<32x64xf32, #tpu.memory_space<vmem>>, vector<32x8xf32>,
    %c0_87 = arith.constant 0 : index
    %c0_88 = arith.constant 0 : index
    %149 = vector.load %arg7[%c0_87, %c0_88] : memref<32x64xf32, #tpu.memory_space<vmem>>, vector<32x64xf32>
    %c0_89 = arith.constant 0 : index
    %c0_90 = arith.constant 0 : index
    %150 = vector.load %arg3[%c0_89, %c0_90] : memref<64x64xf32, #tpu.memory_space<vmem>>, vector<64x64xf32>
    %cst_91 = arith.constant dense<0.000000e+00> : vector<32x64xf32>
    %151 = tpu.matmul %149, %150, %cst_91 {dimension_numbers = #tpu.dot_dimension_numbers<[1], [0], [0], [1], [0, 0, 1, 1], [], []>} : vector<32x64xf32>, vector<64x64xf32>, vector<32x64xf32> -> vector<32x64xf32>
    %c0_92 = arith.constant 0 : index
    %c0_93 = arith.constant 0 : index
    %152 = vector.load %arg4[%c0_92, %c0_93] : memref<1x64xf32, #tpu.memory_space<vmem>>, vector<1x64xf32>
    %153 = vector.broadcast %152 : vector<1x64xf32> to vector<32x64xf32>
    %154 = arith.addf %151, %153 : vector<32x64xf32>
    %c0_94 = arith.constant 0 : index
    %c0_95 = arith.constant 0 : index
    %c0_96 = arith.constant 0 : index
    %155 = vector.load %arg5[%c0_94, %c0_95, %c0_96] : memref<1x32x64xf32, #tpu.memory_space<vmem>>, vector<1x32x64xf32>
    %156 = vector.shape_cast %155 : vector<1x32x64xf32> to vector<32x64xf32>
    %157 = vector.shape_cast %154 : vector<32x64xf32> to vector<1x32x64xf32>
    tpu.vector_store %arg5[%c0_94, %c0_95, %c0_96], %157 {strides = array<i32>} : memref<1x32x64xf32, #tpu.memory_space<vmem>>, vector<1x32x64xf32>,
    return
  }
  func.func @transform_0(%arg0: i32) -> (i32, i32, i32) {
    %c0_i32 = arith.constant 0 : i32
    %c0_i32_0 = arith.constant 0 : i32
    %c0_i32_1 = arith.constant 0 : i32
    return %arg0, %c0_i32, %c0_i32_0 : i32, i32, i32
  }
  func.func @transform_1(%arg0: i32) -> (i32, i32) {
    %c0_i32 = arith.constant 0 : i32
    %c0_i32_0 = arith.constant 0 : i32
    %c0_i32_1 = arith.constant 0 : i32
    return %c0_i32, %c0_i32_0 : i32, i32
  }
  func.func @transform_2(%arg0: i32) -> (i32, i32) {
    %c0_i32 = arith.constant 0 : i32
    %c0_i32_0 = arith.constant 0 : i32
    %c0_i32_1 = arith.constant 0 : i32
    return %c0_i32, %c0_i32_0 : i32, i32
  }
  func.func @transform_3(%arg0: i32) -> (i32, i32) {
    %c0_i32 = arith.constant 0 : i32
    %c0_i32_0 = arith.constant 0 : i32
    %c0_i32_1 = arith.constant 0 : i32
    return %c0_i32, %c0_i32_0 : i32, i32
  }
  func.func @transform_4(%arg0: i32) -> (i32, i32, i32) {
    %c0_i32 = arith.constant 0 : i32
    %c0_i32_0 = arith.constant 0 : i32
    %c0_i32_1 = arith.constant 0 : i32
    return %arg0, %c0_i32, %c0_i32_0 : i32, i32, i32
  }
}

</mosaic_0001>

<bundles_post_ra>
// kernel: tpu_custom_call.1
= control target key start
LH: loop header
LB: loop body
LE: loop exit
PB: predicated region body
PF: predicated region fallthrough
CT: control target
= control target key end

     0   :  { %9 = vsyncpa [#allocation5], 0  ;;  %s5304_s0 = inlined_call_operand.hbm [shape: f32[2,32,64], index: 0, kind: input, shape index: {}]   ;;  %s5305_s1 = inlined_call_operand.hbm [shape: f32[64,192], index: 1, kind: input, shape index: {}]   ;;  %s5306_s2 = inlined_call_operand.hbm [shape: f32[64,64], index: 2, kind: input, shape index: {}]   ;;  %s5307_s3 = inlined_call_operand.vmem [shape: f32[1,64], index: 3, kind: input, shape index: {}]   ;;  %s5308_s4 = inlined_call_operand.hbm [shape: f32[2,32,64], index: 4, kind: output, shape index: {}]  }
   0x1   :  { %11 = vsyncpa [#allocation5 + $0x1], 0 }
   0x2   :  { %12 = vsyncpa [#allocation8], 0 }
   0x3   :  { %13 = vsyncpa [#allocation6], 0 }
   0x4   :  { %15 = vsyncpa [#allocation6 + $0x1], 0  ;;  %s4327_s15 = smov 0   ;;  %s4329_s16 = smov 0  }
   0x5   :  { %s4331_s17 = smov 0   ;;  %s4333_s18 = smov 0  }
   0x6 LB: > { %s4348_s19 = sadd.s32 4294967295, %s4275_s18   ;;  %s3050_s20 = sadd.s32 4294967294, %s4275_s18   ;;  %s4275_s18 = sphi %s4333_s18, %s5346_s18   ;;  %s4271_s17 = sphi %s4331_s17, %s5345_s17   ;;  %s4267_s16 = sphi %s4329_s16, %s5344_s16   ;;  %s4263_s15 = sphi %s4327_s15, %s5343_s15  }
   0x7   : > { %p41_p0 = scmp.ne.s32.totalorder %s4267_s16, %s4263_s15  ;;  %p5309_p1 = scmp.eq.s32.totalorder %s4348_s19, 0 }
   0x8   : > { %p134_p3 = scmp.eq.s32.totalorder %s3050_s20, 1  ;;  %p3051_p5 = scmp.ge.s32.totalorder %s4275_s18, 1 }
   0x9   : > { %p4357_p4 = por %p5309_p1, %p41_p0  ;;  %p141_p7 = scmp.lt.s32.totalorder %s4275_s18, 3 }
   0xa   : > { %p4362_p6 = por %p134_p3, %p41_p0  ;;  %s4277_s24 = smov [#allocation7]  }
   0xb   : > { %s5312_s21 = scalar_select %p4357_p4, 1, 0 }
   0xc   : > { %s5313_s22 = scalar_select %p4362_p6, 1, 0 }
   0xd   : > { %p4367_p8 = pnand %p3051_p5, %p141_p7  ;;  %s153_s25 = sshll.u32 %s4277_s24, 4  ;;  %s4371_s25 = int_to_ptr.vmem [resolvable:$true] %s153_s25 }
   0xe   : > { %s4278_s27 = smov [#allocation9]   ;;  %s4119_s5 = scalar_lea.hbm %s5305_s1, 2048 }
   0xf   : > { %p3765_p9 = pneg %p4367_p8  ;;  %s166_s28 = sshll.u32 %s4278_s27, 4  ;;  %s4382_s28 = int_to_ptr.vmem [resolvable:$true] %s166_s28 }
  0x10   : > { %p4120_p12 = scmp.ne.s32.totalorder %s5305_s1, %s4119_s5  ;;  %p4126_p5 = scmp.lt.u32.totalorder %s4119_s5, %s5305_s1 }
  0x11   : > { %p4378_p11 = pnand %p3765_p9, %p5309_p1 }
  0x13   : > { %p4121_p13 = pneg %p4378_p11 }
  0x15   : > { %p4122_p0 = pnand %p4121_p13, %p4120_p12 }
  0x17   : > { %p4123_p3 = pneg %p4122_p0 }
  0x19   : > { %p4128_p7 = pnand %p4126_p5, %p4123_p3 }
  0x1b   : > { %4131 = shalt.err (!%p4128_p7)
}
  0x1c   : > { %s4132_s10 = scalar_lea.vmem %s4371_s25, 2048  ;;  %p4140_p2 = scmp.lt.s32.totalorder %s4371_s25, %s4371_s25 }
  0x1d   : > { %p4133_p9 = scmp.ne.s32.totalorder %s4371_s25, %s4132_s10  ;;  %p4141_p12 = scmp.lt.s32.totalorder %s4132_s10, %s4132_s10 }
  0x1f   : > { %p4135_p10 = pnand %p4133_p9, %p4121_p13  ;;  %p4142_p0 = por %p4141_p12, %p4140_p2 }
  0x21   : > { %p4136_p1 = pneg %p4135_p10 }
  0x23   : > { %p4143_p6 = pnand %p4142_p0, %p4136_p1 }
  0x25   : > { %4146 = shalt.err (!%p4143_p6)
}
  0x26   : > { %s4279_s11 = smov 256   ;;  %s4280_s12 = smov 16  }
  0x27   : > { %3768 = dma.hbm_to_vmem [thread:$0]  (!%p4378_p11), %s5305_s1, 2048, %s4371_s25, [#allocation8], %s4279_s11, %s4279_s11, %s4280_s12  }
  0x28   : > { %s4147_s27 = scalar_lea.hbm %s5306_s2, 1024 }
  0x29   : > { %p4148_p2 = scmp.ne.s32.totalorder %s5306_s2, %s4147_s27  ;;  %p4154_p10 = scmp.lt.u32.totalorder %s4147_s27, %s5306_s2 }
  0x2b   : > { %p4150_p1 = pnand %p4148_p2, %p4121_p13 }
  0x2d   : > { %p4151_p6 = pneg %p4150_p1 }
  0x2f   : > { %p4156_p3 = pnand %p4154_p10, %p4151_p6 }
  0x31   : > { %4159 = shalt.err (!%p4156_p3)
}
  0x32   : > { %s4160_s25 = scalar_lea.vmem %s4382_s28, 1024  ;;  %p4168_p12 = scmp.lt.s32.totalorder %s4382_s28, %s4382_s28 }
  0x33   : > { %p4161_p5 = scmp.ne.s32.totalorder %s4382_s28, %s4160_s25  ;;  %p4169_p0 = scmp.lt.s32.totalorder %s4160_s25, %s4160_s25 }
  0x35   : > { %p4163_p7 = pnand %p4161_p5, %p4121_p13  ;;  %p4170_p2 = por %p4169_p0, %p4168_p12 }
  0x37   : > { %p4164_p9 = pneg %p4163_p7 }
  0x39   : > { %p4171_p1 = pnand %p4170_p2, %p4164_p9 }
  0x3b   : > { %4174 = shalt.err (!%p4171_p1)
}
  0x3c   : > { %s4281_s7 = smov 128   ;;  %s4282_s8 = smov 8  }
  0x3d   : > { %3771 = dma.hbm_to_vmem [thread:$0]  (!%p4378_p11), %s5306_s2, 1024, %s4382_s28, [#allocation8], %s4281_s7, %s4281_s7, %s4282_s8  }
  0x3e   : > { %s4440_s11 = sadd.s32 1, %s4275_s18   ;;  %s28_s13 = sadd.s32 1, %s4271_s17 }
  0x3f   : > { %s25_s12 = ssub.s32 %s4275_s18, %s4440_s11  ;;  %p35_p6 = scmp.ne.s32.totalorder %s4271_s17, %s4267_s16 }
  0x40   : > { %p26_p13 = scmp.eq.s32.totalorder %s25_s12, 0  ;;  %p36_p10 = scmp.eq.s32.totalorder %s4275_s18, 0 }
  0x41   : > { %p5316_p5 = scmp.eq.s32.totalorder %s4348_s19, 1  ;;  %p3782_p9 = scmp.lt.s32.totalorder %s4275_s18, 2 }
  0x42   : > { %s4449_s14 = scalar_select %p26_p13, %s4271_s17, %s28_s13  }
  0x43   : > { %p37_p3 = por %p36_p10, %p35_p6  ;;  %p4453_p7 = por %p5316_p5, %p35_p6 }
  0x44   : > { %s183_s20 = sand.u32 1, %s4271_s17   ;;  %s3173_s28 = sshll.u32 %s4275_s18, 9 }
  0x45   : > { %s5317_s26 = scalar_select %p4453_p7, 1, 0 }
  0x46   : > { %s3055_s24 = sshll.u32 %s183_s20, 5  ;;  %s4463_s30 = scalar_lea.hbm %s5304_s0, %s3173_s28 }
  0x47   : > { %s187_s5 = scalar_lea.vmem [#allocation4], %s3055_s24  ;;  %p4467_p11 = pnand %p3782_p9, %p37_p3 }
  0x48   : > { %s194_s6 = sshll.u32 %s187_s5, 4  ;;  %s4471_s9 = scalar_lea.sflag [#allocation5], %s183_s20  ;;  %s4465_s6 = int_to_ptr.vmem [resolvable:$true] %s194_s6 }
  0x49   : > { %s4175_s10 = scalar_lea.hbm %s4463_s30, 512  ;;  %p4177_p0 = pneg %p4467_p11 }
  0x4a   : > { %p4176_p12 = scmp.ne.s32.totalorder %s4463_s30, %s4175_s10  ;;  %s4180_s24 = scalar_lea.hbm %s5304_s0, 1024 }
  0x4b   : > { %p4181_p13 = scmp.lt.u32.totalorder %s4463_s30, %s5304_s0  ;;  %p4182_p6 = scmp.lt.u32.totalorder %s4180_s24, %s4175_s10 }
  0x4c   : > { %p4178_p2 = pnand %p4177_p0, %p4176_p12  ;;  %p4184_p3 = scmp.lt.u32.totalorder %s4175_s10, %s4463_s30 }
  0x4d   : > { %p4183_p10 = por %p4182_p6, %p4181_p13 }
  0x4e   : > { %p4179_p1 = pneg %p4178_p2 }
  0x4f   : > { %p4185_p5 = por %p4184_p3, %p4183_p10 }
  0x51   : > { %p4186_p9 = pnand %p4185_p5, %p4179_p1 }
  0x53   : > { %4189 = shalt.err (!%p4186_p9)
}
  0x54   : > { %s4190_s20 = scalar_lea.vmem %s4465_s6, 512  ;;  %s4283_s29 = smov [#allocation4]  }
  0x55   : > { %p4191_p12 = scmp.ne.s32.totalorder %s4465_s6, %s4190_s20  ;;  %s4195_s5 = sshll.u32 %s4283_s29, 4  ;;  %s4196_s5 = int_to_ptr.vmem [resolvable:$false] %s4195_s5 }
  0x56   : > { %s4197_s12 = scalar_lea.vmem %s4196_s5, 1024  ;;  %p4198_p4 = scmp.lt.s32.totalorder %s4465_s6, %s4196_s5 }
  0x57   : > { %p4193_p2 = pnand %p4191_p12, %p4177_p0  ;;  %p4199_p13 = scmp.lt.s32.totalorder %s4197_s12, %s4190_s20 }
  0x59   : > { %p4194_p7 = pneg %p4193_p2  ;;  %p4200_p6 = por %p4199_p13, %p4198_p4 }
  0x5b   : > { %p4201_p10 = pnand %p4200_p6, %p4194_p7 }
  0x5d   : > { %4204 = shalt.err (!%p4201_p10)
}
  0x5e   : > { %3775 = dma.hbm_to_vmem [thread:$0]  (!%p4467_p11), %s4463_s30, 512, %s4465_s6, %s4471_s9, %s4281_s7, %s4281_s7, %s4282_s8  }
  0x5f   : > { %206 = sbr.rel (%p4367_p8) target bundleno = 3149 (0xc4d), region = 36 }
  0x66   : > { %s4505_s10 = sand.u32 1, %s4267_s16   ;;  %p5319_p4 = scmp.ne.s32.totalorder %s5312_s21, 0 }
  0x67   : > { %s3059_s13 = sshll.u32 %s4505_s10, 5  ;;  %s209_s24 = scalar_lea.sflag [#allocation5], %s4505_s10 }
  0x68   : > { %s4511_s25 = scalar_lea.vmem [#allocation4], %s3059_s13 }
  0x69   : > { %4250 = dma.done.wait (%p5319_p4), %s209_s24, 512  }
  0x6a   : > { %4252 = vsyncadd (%p5319_p4), %s209_s24, 4294966784  ;;  %p5320_p7 = scmp.eq.s32.totalorder %s4348_s19, 0 }
  0x6c   : > { %4254 = dma.done.wait (%p5320_p7), [#allocation8], 3072   ;;  %p5321_p8 = pmov %p5320_p7 }
  0x6d   : > { %v4284_v0 = vmov 0.0   ;;  %v250_v1 = vld [vmem:[#allocation7 + $0x8] sm:$0xff]  ;;  %v252_v2 = vld [vmem:[#allocation7 + $0x18] sm:$0xff]  ;;  %v249_v3 = vld [vmem:[#allocation7] sm:$0xff]  ;;  %vm265_vm0 = vcmask 523264   ;;  %vm395_vm1 = vcmask 64512  }
  0x6e   : > { %4256 = vsyncadd (%p5321_p8), [#allocation8], 4294964224  ;;  %342 = vmatprep.mubr.f32.mxu0 %v4284_v0  ;;  %v3561_v4 = vpack.c.bf16 %v252_v2, %v250_v1  ;;  %v251_v5 = vld [vmem:[#allocation7 + $0x10] sm:$0xff]  ;;  %v254_v6 = vld [vmem:[#allocation7 + $0x28] sm:$0xff]  ;;  %s4285_s21 = smov 64   ;;  %s4286_s23 = smov 56  }
  0x6f   : > { %v256_v7 = vld [vmem:[#allocation7 + $0x38] sm:$0xff]  ;;  %v3563_v8 = vpack.c.bf16 %v251_v5, %v249_v3  ;;  %v253_v10 = vld [vmem:[#allocation7 + $0x20] sm:$0xff]  ;;  %v255_v11 = vld [vmem:[#allocation7 + $0x30] sm:$0xff]  ;;  %s4287_s7 = smov 48   ;;  %s4288_s8 = smov 120   ;;  %vm501_vm3 = vcmask 261120  }
  0x70   : > { %v3565_v9 = vpack.c.bf16 %v256_v7, %v254_v6  ;;  %v258_v12 = vld [vmem:[#allocation7 + $0x48] sm:$0xff]  ;;  %3562 = vmatprep.subr.bf16.mxu0 %v3561_v4  ;;  %v260_v13 = vld [vmem:[#allocation7 + $0x58] sm:$0xff]  ;;  %v3567_v14 = vpack.c.bf16 %v255_v11, %v253_v10  ;;  %v257_v16 = vld [vmem:[#allocation7 + $0x40] sm:$0xff]  ;;  %s4289_s30 = smov 112   ;;  %s4290_s6 = smov 40   ;;  %vm953_vm4 = vcmask 130112  }
  0x71   : > { %3564 = vmatpush1.bf16.msra.mxu0 %v3563_v8  ;;  %v3569_v15 = vpack.c.bf16 %v260_v13, %v258_v12  ;;  %v259_v17 = vld [vmem:[#allocation7 + $0x50] sm:$0xff]  ;;  %v262_v18 = vld [vmem:[#allocation7 + $0x68] sm:$0xff]  ;;  %v264_v19 = vld [vmem:[#allocation7 + $0x78] sm:$0xff]  ;;  %s4291_s9 = smov 32   ;;  %s4292_s28 = smov 104   ;;  %vm1264_vm5 = vcmask 195712  }
  0x72   : > { %3566 = vmatprep.subr.bf16.mxu0 %v3565_v9  ;;  %v3571_v20 = vpack.c.bf16 %v259_v17, %v257_v16  ;;  %v3573_v21 = vpack.c.bf16 %v264_v19, %v262_v18  ;;  %v261_v22 = vld [vmem:[#allocation7 + $0x60] sm:$0xff]  ;;  %v263_v23 = vld [vmem:[#allocation7 + $0x70] sm:$0xff]  ;;  %v246_v26 = vld [vmem:[%s4511_s25 + $0x8] sm:$0xff]  ;;  %s4293_s27 = smov 96   ;;  %s4294_s20 = smov 24   ;;  %vm1575_vm6 = vcmask 261312  }
  0x73   : > { %v3575_v24 = vpack.c.bf16 %v263_v23, %v261_v22  ;;  %v245_v25 = vld [vmem:[%s4511_s25] sm:$0xff]  ;;  %v247_v27 = vld [vmem:[%s4511_s25 + $0x10] sm:$0xff]  ;;  %v248_v28 = vld [vmem:[%s4511_s25 + $0x18] sm:$0xff]  ;;  %s4295_s29 = smov 88   ;;  %s4296_s5 = smov 16   ;;  %vm1886_vm7 = vcmask 326912  }
  0x74   : > { %vm4589_vm2 = vmpackc.low %vm395_vm1, %vm395_vm1  ;;  %s4297_s12 = smov 80   ;;  %s4298_s24 = smov 8   ;;  %vm2197_vm8 = vcmask 392512   ;;  %vm2508_vm9 = vcmask 458112   ;;  %vm2819_vm10 = vcmask 523712  }
  0x75   : > { %3568 = vmatpush1.bf16.msra.mxu0 %v3567_v14  ;;  %s4299_s25 = smov 72   ;;  %p5340_p0 = scmp.ne.s32.totalorder %s5317_s26, 0 }
  0x76   : > { %3570 = vmatprep.subr.bf16.mxu0 %v3569_v15 }
  0x79   : > { %3572 = vmatpush1.bf16.msra.mxu0 %v3571_v20 }
  0x7a   : > { %3574 = vmatprep.subr.bf16.mxu0 %v3573_v21 }
  0x7d   : > { %3576 = vmatpush1.bf16.msra.mxu0 %v3575_v24 }
  0x80   : > { %3063 = vmatmul.mubr.msk.f32.vlgmr.msra.gmra.mrb[0].mxu0 %vm265_vm0, %v245_v25 }
  0x81   : > { %348 = vmatprep.mubr.f32.mxu0 %v4284_v0 }
  0x84   : > { %3064 = vmatmul.mubr.msk.f32.gmra.mrb[2].mxu0 %vm265_vm0, %v246_v26 }
  0x85   : > { %354 = vmatprep.mubr.f32.mxu0 %v4284_v0 }
  0x88   : > { %3065 = vmatmul.mubr.msk.f32.gmra.mrb[4].mxu0 %vm265_vm0, %v247_v27 }
  0x89   : > { %360 = vmatprep.mubr.f32.mxu0 %v4284_v0 }
  0x8c   : > { %3066 = vmatmul.mubr.msk.f32.gmra.mrb[6].mxu0 %vm265_vm0, %v248_v28 }
 0x153   : > { %v4529_v29 = vpop.f32.mrb[0].mxu0 }
 0x154   : > { %367 = vst [vmem:[#allocation2] sm:$0xff] %v4529_v29  ;;  %v346_v30 = vpop.f32.mrb[1].mxu0  ;;  %3323 = vmatprep.mubr.msk.f32.mxu1 %vm395_vm1, %v4529_v29 }
 0x155   : > { %368 = vst.msk [vmem:[#allocation2 + $0x8] sm:$0xff] %vm265_vm0, %v346_v30 }
 0x157   : > { %v4535_v31 = vpop.f32.mrb[2].mxu0 }
 0x158   : > { %369 = vst [vmem:[#allocation2 + $0x10] sm:$0xff] %v4535_v31  ;;  %v352_v32 = vpop.f32.mrb[3].mxu0  ;;  %v4540_v33 = vpack.i.bf16 %v4535_v31, %v4529_v29 }
 0x159   : > { %370 = vst.msk [vmem:[#allocation2 + $0x18] sm:$0xff] %vm265_vm0, %v352_v32 }
 0x15a   : > { %3842 = vrot.lane.b32.xlu0 %v4540_v33, %s4285_s21 }
 0x15b   : > { %v4544_v34 = vpop.f32.mrb[4].mxu0 }
 0x15c   : > { %371 = vst [vmem:[#allocation2 + $0x20] sm:$0xff] %v4544_v34  ;;  %v358_v35 = vpop.f32.mrb[5].mxu0  ;;  %v651_v39 = vld [vmem:[#allocation2 + $0x8] sm:$0xff] }
 0x15d   : > { %372 = vst.msk [vmem:[#allocation2 + $0x28] sm:$0xff] %vm265_vm0, %v358_v35 }
 0x15e   : > { %3847 = vrot.lane.b32.xlu0 %v4540_v33, %s4286_s23 }
 0x15f   : > { %v4550_v36 = vpop.f32.mrb[6].mxu0 }
 0x160   : > { %373 = vst [vmem:[#allocation2 + $0x30] sm:$0xff] %v4550_v36  ;;  %v364_v37 = vpop.f32.mrb[7].mxu0  ;;  %v4555_v38 = vpack.i.bf16 %v4550_v36, %v4544_v34  ;;  %v652_v40 = vld [vmem:[#allocation2 + $0x18] sm:$0xff] }
 0x161   : > { %374 = vst.msk [vmem:[#allocation2 + $0x38] sm:$0xff] %vm265_vm0, %v364_v37  ;;  %v4558_v41 = vpack.c.bf16 %v652_v40, %v651_v39  ;;  %v4582_v46 = vpack.i.bf16 %v652_v40, %v651_v39 }
 0x162   : > { %3862 = vrot.lane.b32.xlu0 %v4540_v33, %s4287_s7  ;;  %3852 = vrot.lane.b32.xlu1 %v4555_v38, %s4285_s21 }
 0x164   : > { %v653_v42 = vld [vmem:[#allocation2 + $0x28] sm:$0xff] }
 0x166   : > { %661 = vrot.lane.b32.xlu0 %v4535_v31, %s4288_s8  ;;  %3857 = vrot.lane.b32.xlu1 %v4555_v38, %s4286_s23 }
 0x168   : > { %v654_v43 = vld [vmem:[#allocation2 + $0x38] sm:$0xff] }
 0x169   : > { %v3593_v44 = vpack.c.bf16 %v654_v43, %v653_v42  ;;  %v4575_v45 = vpack.i.bf16 %v654_v43, %v653_v42 }
 0x16a   : > { %663 = vrot.lane.b32.xlu0 %v4544_v34, %s4288_s8  ;;  %659 = vrot.lane.b32.xlu1 %v4529_v29, %s4288_s8 }
 0x16e   : > { %970 = vrot.lane.b32.xlu0 %v4529_v29, %s4289_s30  ;;  %3867 = vrot.lane.b32.xlu1 %v4555_v38, %s4287_s7 }
 0x172   : > { %974 = vrot.lane.b32.xlu0 %v4544_v34, %s4289_s30  ;;  %665 = vrot.lane.b32.xlu1 %v4550_v36, %s4288_s8 }
 0x176   : > { %972 = vrot.lane.b32.xlu1 %v4535_v31, %s4289_s30  ;;  %3882 = vrot.lane.b32.xlu0 %v4575_v45, %s4288_s8 }
 0x17a   : > { %976 = vrot.lane.b32.xlu1 %v4550_v36, %s4289_s30 }
 0x17e   : > { %3872 = vrot.lane.b32.xlu1 %v4582_v46, %s4288_s8 }
 0x182   : > { %3877 = vrot.lane.b32.xlu1 %v4582_v46, %s4289_s30 }
 0x1cc   : > { %v3843_v47 = vpop.permute.xlu0 %3842 }
 0x1cd   : > { %v3845_v48 = vunpack.i.h.bf16 %v3843_v47  ;;  %v3844_v49 = vunpack.i.l.bf16 %v3843_v47 }
 0x1cf   : > { %v3577_v51 = vpack.c.bf16 %v3845_v48, %v3844_v49 }
 0x1d0   : > { %v3848_v52 = vpop.permute.xlu0 %3847 }
 0x1d1   : > { %v3850_v53 = vunpack.i.h.bf16 %v3848_v52  ;;  %v3849_v54 = vunpack.i.l.bf16 %v3848_v52  ;;  %3579 = vmatprep.subr.msk.bf16.mxu1 %vm4589_vm2, %v3577_v51 }
 0x1d2   : > { %3582 = vmatpush3.bf16.xpose.msk.msra.mxu1 %vm4589_vm2, %v3577_v51 }
 0x1d3   : > { %v3597_v55 = vpack.c.bf16 %v3850_v53, %v3849_v54 }
 0x1d4   : > { %v3853_v56 = vpop.permute.xlu1 %3852  ;;  %v3863_v59 = vpop.permute.xlu0 %3862 }
 0x1d5   : > { %v3855_v57 = vunpack.i.h.bf16 %v3853_v56  ;;  %v3854_v58 = vunpack.i.l.bf16 %v3853_v56  ;;  %3599 = vmatprep.subr.msk.bf16.mxu0 %vm4589_vm2, %v3597_v55  ;;  %v3865_v62 = vunpack.i.h.bf16 %v3863_v59  ;;  %v3864_v63 = vunpack.i.l.bf16 %v3863_v59 }
 0x1d6   : > { %3602 = vmatpush3.bf16.xpose.msk.msra.mxu0 %vm4589_vm2, %v3597_v55 }
 0x1d7   : > { %v3583_v60 = vpack.c.bf16 %v3855_v57, %v3854_v58  ;;  %v3617_v4 = vpack.c.bf16 %v3865_v62, %v3864_v63 }
 0x1d8   : > { %v3858_v61 = vpop.permute.xlu1 %3857  ;;  %v662_v5 = vpop.permute.xlu0 %661 }
 0x1d9   : > { %v3860_v0 = vunpack.i.h.bf16 %v3858_v61  ;;  %v3859_v1 = vunpack.i.l.bf16 %v3858_v61  ;;  %3585 = vmatprep.subr.msk.bf16.mxu1 %vm4589_vm2, %v3583_v60 }
 0x1da   : > { %3588 = vmatpush3.bf16.xpose.msk.msra.mxu1 %vm4589_vm2, %v3583_v60 }
 0x1db   : > { %v3603_v2 = vpack.c.bf16 %v3860_v0, %v3859_v1  ;;  %3590 = vmatprep.subr.bf16.mxu1 %v4558_v41 }
 0x1dc   : > { %v660_v3 = vpop.permute.xlu1 %659  ;;  %v664_v9 = vpop.permute.xlu0 %663 }
 0x1dd   : > { %3605 = vmatprep.subr.msk.bf16.mxu0 %vm4589_vm2, %v3603_v2  ;;  %3351 = vmatprep.mubr.msk.f32.mxu0 %vm395_vm1, %v660_v3 }
 0x1de   : > { %3608 = vmatpush3.bf16.xpose.msk.msra.mxu0 %vm4589_vm2, %v3603_v2 }
 0x1df   : > { %3619 = vmatprep.subr.msk.bf16.mxu0 %vm4589_vm2, %v3617_v4 }
 0x1e0   : > { %v3868_v6 = vpop.permute.xlu1 %3867  ;;  %v971_v13 = vpop.permute.xlu0 %970 }
 0x1e1   : > { %3324 = vmatmul.mubr.msk.f32.vlgmr.msra.gmra.mrb[0].mxu1 %vm395_vm1, %v4535_v31  ;;  %v3870_v7 = vunpack.i.h.bf16 %v3868_v6  ;;  %v3869_v8 = vunpack.i.l.bf16 %v3868_v6 }
 0x1e2   : > { %3326 = vmatprep.mubr.msk.f32.mxu1 %vm395_vm1, %v4544_v34  ;;  %3592 = vmatpush3.bf16.msra.mxu1 %v4558_v41 }
 0x1e3   : > { %3594 = vmatprep.subr.bf16.mxu1 %v3593_v44  ;;  %v3623_v11 = vpack.c.bf16 %v3870_v7, %v3869_v8 }
 0x1e4   : > { %v666_v10 = vpop.permute.xlu1 %665  ;;  %v975_v19 = vpop.permute.xlu0 %974 }
 0x1e5   : > { %3327 = vmatmul.mubr.msk.f32.gmra.mrb[2].mxu1 %vm395_vm1, %v4550_v36  ;;  %3352 = vmatmul.mubr.msk.f32.vlgmr.msra.gmra.mrb[8].mxu0 %vm395_vm1, %v662_v5 }
 0x1e6   : > { %3596 = vmatpush3.bf16.msra.mxu1 %v3593_v44  ;;  %3354 = vmatprep.mubr.msk.f32.mxu0 %vm395_vm1, %v664_v9 }
 0x1e7   : > { %3622 = vmatpush3.bf16.xpose.msk.msra.mxu0 %vm4589_vm2, %v3617_v4 }
 0x1e8   : > { %3625 = vmatprep.subr.msk.bf16.mxu0 %vm4589_vm2, %v3623_v11  ;;  %v973_v12 = vpop.permute.xlu1 %972  ;;  %v3883_v2 = vpop.permute.xlu0 %3882 }
 0x1e9   : > { %3355 = vmatmul.mubr.msk.f32.gmra.mrb[10].mxu0 %vm395_vm1, %v666_v10 }
 0x1ea   : > { %3379 = vmatprep.mubr.msk.f32.mxu0 %vm395_vm1, %v971_v13 }
 0x1ec   : > { %v977_v14 = vpop.permute.xlu1 %976 }
 0x1ef   : > { %3628 = vmatpush3.bf16.xpose.msk.msra.mxu0 %vm4589_vm2, %v3623_v11 }
 0x1f0   : > { %v3873_v15 = vpop.permute.xlu1 %3872 }
 0x1f1   : > { %v3875_v16 = vunpack.i.h.bf16 %v3873_v15  ;;  %v3874_v17 = vunpack.i.l.bf16 %v3873_v15 }
 0x1f3   : > { %v4630_v18 = vpack.c.bf16 %v3875_v16, %v3874_v17  ;;  %v3885_v17 = vunpack.i.h.bf16 %v3883_v2 }
 0x1f4   : > { %v3878_v1 = vpop.permute.xlu1 %3877 }
 0x1f5   : > { %3610 = vmatprep.subr.bf16.mxu1 %v4630_v18 }
 0x1f6   : > { %3380 = vmatmul.mubr.msk.f32.vlgmr.msra.gmra.mrb[12].mxu0 %vm395_vm1, %v973_v12 }
 0x1f7   : > { %3382 = vmatprep.mubr.msk.f32.mxu0 %vm395_vm1, %v975_v19  ;;  %v3884_v19 = vunpack.i.l.bf16 %v3883_v2 }
 0x1fa   : > { %3383 = vmatmul.mubr.msk.f32.gmra.mrb[14].mxu0 %vm395_vm1, %v977_v14 }
 0x2b4   : > { %v3325_v20 = vpop.f32.mrb[0].mxu1 }
 0x2b5   : > { %v4636_v21 = vmul.f32 0.35355338, %v3325_v20  ;;  %v478_v22 = vpop.f32.mrb[1].mxu1 }
 0x2b6   : > { %v4644_v32 = vmul.f32 0.35355338, %v478_v22 }
 0x2b7   : > { %v505_v23 = vsel %vm501_vm3, %v4636_v21, -inf }
 0x2b8   : > { %506 = vmax.xlane.f32.xlu1 %v505_v23  ;;  %v3328_v24 = vpop.f32.mrb[2].mxu1  ;;  %v3353_v25 = vpop.f32.mrb[8].mxu0  ;;  %v502_v43 = vsel %vm501_vm3, %v4644_v32, -inf }
 0x2b9   : > { %v4640_v26 = vmul.f32 0.35355338, %v3353_v25  ;;  %v488_v27 = vpop.f32.mrb[3].mxu1  ;;  %v757_v28 = vpop.f32.mrb[9].mxu0  ;;  %v4652_v42 = vmul.f32 0.35355338, %v3328_v24 }
 0x2ba   : > { %v4642_v30 = vmul.f32 0.35355338, %v757_v28  ;;  %v4662_v49 = vmul.f32 0.35355338, %v488_v27 }
 0x2bb   : > { %v783_v35 = vsel %vm501_vm3, %v4640_v26, -inf  ;;  %v511_v48 = vsel %vm501_vm3, %v4652_v42, -inf }
 0x2bc   : > { %v3356_v37 = vpop.f32.mrb[10].mxu0  ;;  %784 = vmax.xlane.f32.xlu0 %v783_v35  ;;  %v780_v39 = vsel %vm501_vm3, %v4642_v30, -inf  ;;  %v508_v55 = vsel %vm501_vm3, %v4662_v49, -inf  ;;  %v3613_v35 = vpack.c.bf16 %v3885_v17, %v3884_v19 }
 0x2bd   : > { %781 = vmax.xlane.f32.xlu1 %v780_v39  ;;  %v767_v40 = vpop.f32.mrb[11].mxu0  ;;  %v4658_v47 = vmul.f32 0.35355338, %v3356_v37 }
 0x2be   : > { %v4650_v41 = vmul.f32 0.35355338, %v767_v40 }
 0x2bf   : > { %v789_v51 = vsel %vm501_vm3, %v4658_v47, -inf }
 0x2c0   : > { %503 = vmax.xlane.f32.xlu0 %v502_v43  ;;  %v786_v44 = vsel %vm501_vm3, %v4650_v41, -inf }
 0x2c1   : > { %787 = vmax.xlane.f32.xlu1 %v786_v44 }
 0x2c4   : > { %512 = vmax.xlane.f32.xlu0 %v511_v48 }
 0x2c8   : > { %790 = vmax.xlane.f32.xlu0 %v789_v51 }
 0x2c9   : > { %v3381_v52 = vpop.f32.mrb[12].mxu0 }
 0x2ca   : > { %v1068_v53 = vpop.f32.mrb[13].mxu0  ;;  %v4666_v54 = vmul.f32 0.35355338, %v3381_v52 }
 0x2cb   : > { %v4676_v59 = vmul.f32 0.35355338, %v1068_v53 }
 0x2cc   : > { %509 = vmax.xlane.f32.xlu0 %v508_v55  ;;  %v1094_v58 = vsel %vm501_vm3, %v4666_v54, -inf }
 0x2cd   : > { %v3384_v56 = vpop.f32.mrb[14].mxu0  ;;  %v1091_v60 = vsel %vm501_vm3, %v4676_v59, -inf }
 0x2ce   : > { %v1078_v57 = vpop.f32.mrb[15].mxu0  ;;  %v4680_v61 = vmul.f32 0.35355338, %v3384_v56 }
 0x2cf   : > { %v4690_v63 = vmul.f32 0.35355338, %v1078_v57 }
 0x2d0   : > { %1095 = vmax.xlane.f32.xlu0 %v1094_v58  ;;  %v1100_v62 = vsel %vm501_vm3, %v4680_v61, -inf }
 0x2d1   : > { %v1097_v0 = vsel %vm501_vm3, %v4690_v63, -inf }
 0x2d2   : > { %3892 = vrot.lane.b32.xlu1 %v4540_v33, %s4290_s6 }
 0x2e6   : > { %3887 = vrot.lane.b32.xlu0 %v4575_v45, %s4289_s30  ;;  %s3174_s30 = sshll.u32 %s4348_s19, 9 }
 0x2f6   : > { %1092 = vmax.xlane.f32.xlu1 %v1091_v60 }
 0x305   : > { %1101 = vmax.xlane.f32.xlu0 %v1100_v62 }
 0x307   : > { %3897 = vrot.lane.b32.xlu1 %v4555_v38, %s4290_s6 }
 0x31b   : > { %3902 = vrot.lane.b32.xlu0 %v4540_v33, %s4291_s9 }
 0x31f   : > { %1283 = vrot.lane.b32.xlu0 %v4535_v31, %s4292_s28 }
 0x323   : > { %1285 = vrot.lane.b32.xlu0 %v4544_v34, %s4292_s28 }
 0x327   : > { %1592 = vrot.lane.b32.xlu0 %v4529_v29, %s4293_s27 }
 0x32b   : > { %1098 = vmax.xlane.f32.xlu1 %v1097_v0  ;;  %1596 = vrot.lane.b32.xlu0 %v4544_v34, %s4293_s27 }
 0x32f   : > { %3917 = vrot.lane.b32.xlu0 %v4575_v45, %s4292_s28 }
 0x33c   : > { %1281 = vrot.lane.b32.xlu1 %v4529_v29, %s4292_s28 }
 0x340   : > { %3907 = vrot.lane.b32.xlu1 %v4555_v38, %s4291_s9 }
 0x344   : > { %1287 = vrot.lane.b32.xlu1 %v4550_v36, %s4292_s28 }
 0x345   : > { %v507_v3 = vpop.xlane.xlu1 %506 }
 0x346   : > { %v515_v5 = vsub.f32 %v4636_v21, %v507_v3 }
 0x348   : > { %1594 = vrot.lane.b32.xlu1 %v4535_v31, %s4293_s27  ;;  %v520_v8 = vmul.f32 1.442695, %v515_v5 }
 0x349   : > { %v785_v4 = vpop.xlane.xlu0 %784 }
 0x34a   : > { %v782_v11 = vpop.xlane.xlu1 %781  ;;  %v793_v21 = vsub.f32 %v4640_v26, %v785_v4 }
 0x34b   : > { %v792_v14 = vsub.f32 %v4642_v30, %v782_v11  ;;  %v3880_v30 = vunpack.i.h.bf16 %v3878_v1 }
 0x34c   : > { %1598 = vrot.lane.b32.xlu1 %v4550_v36, %s4293_s27  ;;  %v798_v26 = vmul.f32 1.442695, %v793_v21 }
 0x34d   : > { %v504_v6 = vpop.xlane.xlu0 %503  ;;  %v796_v24 = vmul.f32 1.442695, %v792_v14 }
 0x34e   : > { %v514_v7 = vsub.f32 %v4644_v32, %v504_v6  ;;  %v788_v15 = vpop.xlane.xlu1 %787  ;;  %v3879_v32 = vunpack.i.l.bf16 %v3878_v1 }
 0x34f   : > { %v794_v25 = vsub.f32 %v4650_v41, %v788_v15 }
 0x350   : > { %v518_v9 = vmul.f32 1.442695, %v514_v7  ;;  %3912 = vrot.lane.b32.xlu1 %v4582_v46, %s4292_s28  ;;  %v3629_v41 = vpack.c.bf16 %v3880_v30, %v3879_v32  ;;  %s2945_s28 = scalar_lea.sflag [#allocation6], %s4505_s10 }
 0x351   : > { %v513_v10 = vpop.xlane.xlu0 %512  ;;  %v800_v39 = vmul.f32 1.442695, %v794_v25 }
 0x352   : > { %3991 = vpow2.f32 %v518_v9  ;;  %v517_v13 = vsub.f32 %v4652_v42, %v513_v10  ;;  %v3893_v51 = vpop.permute.xlu1 %3892 }
 0x353   : > { %3993 = vpow2.f32 %v520_v8  ;;  %v3895_v55 = vunpack.i.h.bf16 %v3893_v51  ;;  %v3894_v56 = vunpack.i.l.bf16 %v3893_v51 }
 0x354   : > { %v524_v22 = vmul.f32 1.442695, %v517_v13 }
 0x355   : > { %v791_v12 = vpop.xlane.xlu0 %790  ;;  %v3637_v60 = vpack.c.bf16 %v3895_v55, %v3894_v56 }
 0x356   : > { %v795_v37 = vsub.f32 %v4658_v47, %v791_v12 }
 0x358   : > { %v802_v42 = vmul.f32 1.442695, %v795_v37 }
 0x359   : > { %v510_v16 = vpop.xlane.xlu0 %509 }
 0x35a   : > { %v516_v20 = vsub.f32 %v4662_v49, %v510_v16 }
 0x35c   : > { %v4714_v23 = vpop.eup %3991  ;;  %v522_v27 = vmul.f32 1.442695, %v516_v20 }
 0x35d   : > { %v4717_v28 = vpop.eup %3993  ;;  %3337 = vmatprep.mubr.msk.f32.mxu1 %vm501_vm3, %v4714_v23  ;;  %v1096_v40 = vpop.xlane.xlu0 %1095 }
 0x35e   : > { %3995 = vpow2.f32 %v522_v27  ;;  %3338 = vmatmul.mubr.msk.f32.vlgmr.msra.gmra.mrb[4].mxu1 %vm501_vm3, %v4717_v28  ;;  %v1104_v62 = vsub.f32 %v4666_v54, %v1096_v40 }
 0x35f   : > { %3997 = vpow2.f32 %v524_v22  ;;  %3612 = vmatpush3.bf16.msra.mxu1 %v4630_v18 }
 0x360   : > { %3999 = vpow2.f32 %v796_v24  ;;  %3614 = vmatprep.subr.bf16.mxu1 %v3613_v35  ;;  %v1109_v2 = vmul.f32 1.442695, %v1104_v62 }
 0x361   : > { %4001 = vpow2.f32 %v798_v26  ;;  %v3888_v43 = vpop.permute.xlu0 %3887 }
 0x362   : > { %4003 = vpow2.f32 %v800_v39  ;;  %v3890_v47 = vunpack.i.h.bf16 %v3888_v43  ;;  %v3889_v49 = vunpack.i.l.bf16 %v3888_v43 }
 0x363   : > { %3616 = vmatpush3.bf16.msra.mxu1 %v3613_v35  ;;  %4005 = vpow2.f32 %v802_v42 }
 0x364   : > { %3630 = vmatprep.subr.bf16.mxu1 %v3629_v41  ;;  %v3633_v57 = vpack.c.bf16 %v3890_v47, %v3889_v49 }
 0x368   : > { %v4725_v44 = vpop.eup %3995 }
 0x369   : > { %v4727_v48 = vpop.eup %3997  ;;  %3340 = vmatprep.mubr.msk.f32.mxu1 %vm501_vm3, %v4725_v44 }
 0x36a   : > { %v4731_v18 = vpop.eup %3999  ;;  %3341 = vmatmul.mubr.msk.f32.gmra.mrb[6].mxu1 %vm501_vm3, %v4727_v48 }
 0x36b   : > { %3365 = vmatprep.mubr.msk.f32.mxu1 %vm501_vm3, %v4731_v18  ;;  %v4737_v52 = vpop.eup %4001 }
 0x36c   : > { %v4739_v53 = vpop.eup %4003 }
 0x36d   : > { %v4745_v58 = vpop.eup %4005 }
 0x36e   : > { %3366 = vmatmul.mubr.msk.f32.vlgmr.msra.gmra.mrb[8].mxu1 %vm501_vm3, %v4737_v52 }
 0x36f   : > { %3632 = vmatpush3.bf16.msra.mxu1 %v3629_v41  ;;  %3368 = vmatprep.mubr.msk.f32.mxu1 %vm501_vm3, %v4739_v53 }
 0x370   : > { %3634 = vmatprep.subr.bf16.mxu1 %v3633_v57 }
 0x372   : > { %3369 = vmatmul.mubr.msk.f32.gmra.mrb[10].mxu1 %vm501_vm3, %v4745_v58 }
 0x373   : > { %3636 = vmatpush3.bf16.msra.mxu1 %v3633_v57 }
 0x374   : > { %3639 = vmatprep.subr.msk.bf16.mxu1 %vm4589_vm2, %v3637_v60 }
 0x383   : > { %v1093_v0 = vpop.xlane.xlu1 %1092 }
 0x384   : > { %v1103_v1 = vsub.f32 %v4676_v59, %v1093_v0 }
 0x386   : > { %v1107_v3 = vmul.f32 1.442695, %v1103_v1 }
 0x387   : > { %v3898_v4 = vpop.permute.xlu1 %3897 }
 0x388   : > { %4007 = vpow2.f32 %v1107_v3  ;;  %v3900_v5 = vunpack.i.h.bf16 %v3898_v4  ;;  %v3899_v6 = vunpack.i.l.bf16 %v3898_v4 }
 0x389   : > { %4009 = vpow2.f32 %v1109_v2 }
 0x38a   : > { %v3643_v10 = vpack.c.bf16 %v3900_v5, %v3899_v6 }
 0x392   : > { %v4753_v7 = vpop.eup %4007  ;;  %v1102_v8 = vpop.xlane.xlu0 %1101 }
 0x393   : > { %v4755_v9 = vpop.eup %4009  ;;  %3393 = vmatprep.mubr.msk.f32.mxu1 %vm501_vm3, %v4753_v7  ;;  %v1106_v16 = vsub.f32 %v4680_v61, %v1102_v8 }
 0x394   : > { %3394 = vmatmul.mubr.msk.f32.vlgmr.msra.gmra.mrb[12].mxu1 %vm501_vm3, %v4755_v9 }
 0x395   : > { %3642 = vmatpush3.bf16.xpose.msk.msra.mxu1 %vm4589_vm2, %v3637_v60  ;;  %v1113_v20 = vmul.f32 1.442695, %v1106_v16 }
 0x396   : > { %3645 = vmatprep.subr.msk.bf16.mxu1 %vm4589_vm2, %v3643_v10  ;;  %v3903_v54 = vpop.permute.xlu0 %3902 }
 0x397   : > { %v3905_v59 = vunpack.i.h.bf16 %v3903_v54  ;;  %v3904_v11 = vunpack.i.l.bf16 %v3903_v54 }
 0x399   : > { %v3657_v12 = vpack.c.bf16 %v3905_v59, %v3904_v11 }
 0x39a   : > { %v1284_v13 = vpop.permute.xlu0 %1283 }
 0x39b   : > { %3659 = vmatprep.subr.msk.bf16.mxu0 %vm4589_vm2, %v3657_v12 }
 0x39c   : > { %3662 = vmatpush3.bf16.xpose.msk.msra.mxu0 %vm4589_vm2, %v3657_v12 }
 0x39d   : > { %3648 = vmatpush3.bf16.xpose.msk.msra.mxu1 %vm4589_vm2, %v3643_v10 }
 0x39e   : > { %v1286_v14 = vpop.permute.xlu0 %1285 }
 0x3a2   : > { %v1593_v15 = vpop.permute.xlu0 %1592 }
 0x3a3   : > { %3435 = vmatprep.mubr.msk.f32.mxu0 %vm395_vm1, %v1593_v15 }
 0x3b8   : > { %v1099_v17 = vpop.xlane.xlu1 %1098 }
 0x3b9   : > { %v1105_v19 = vsub.f32 %v4690_v63, %v1099_v17  ;;  %v1597_v63 = vpop.permute.xlu0 %1596 }
 0x3bb   : > { %v1111_v21 = vmul.f32 1.442695, %v1105_v19 }
 0x3bc   : > { %v1282_v22 = vpop.permute.xlu1 %1281 }
 0x3bd   : > { %4011 = vpow2.f32 %v1111_v21  ;;  %v3918_v39 = vpop.permute.xlu0 %3917 }
 0x3be   : > { %4013 = vpow2.f32 %v1113_v20  ;;  %v3920_v41 = vunpack.i.h.bf16 %v3918_v39  ;;  %v3919_v42 = vunpack.i.l.bf16 %v3918_v39 }
 0x3c0   : > { %v3908_v24 = vpop.permute.xlu1 %3907  ;;  %v3653_v51 = vpack.c.bf16 %v3920_v41, %v3919_v42 }
 0x3c1   : > { %v3910_v25 = vunpack.i.h.bf16 %v3908_v24  ;;  %v3909_v27 = vunpack.i.l.bf16 %v3908_v24 }
 0x3c3   : > { %v3663_v30 = vpack.c.bf16 %v3910_v25, %v3909_v27 }
 0x3c4   : > { %v1288_v32 = vpop.permute.xlu1 %1287 }
 0x3c5   : > { %3665 = vmatprep.subr.msk.bf16.mxu0 %vm4589_vm2, %v3663_v30 }
 0x3c6   : > { %3668 = vmatpush3.bf16.xpose.msk.msra.mxu0 %vm4589_vm2, %v3663_v30 }
 0x3c7   : > { %v4778_v61 = vpop.eup %4011 }
 0x3c8   : > { %v4780_v35 = vpop.eup %4013  ;;  %v1595_v26 = vpop.permute.xlu1 %1594  ;;  %3396 = vmatprep.mubr.msk.f32.mxu1 %vm501_vm3, %v4778_v61 }
 0x3c9   : > { %3397 = vmatmul.mubr.msk.f32.gmra.mrb[14].mxu1 %vm501_vm3, %v4780_v35 }
 0x3ca   : > { %3407 = vmatprep.mubr.msk.f32.mxu1 %vm395_vm1, %v1282_v22 }
 0x3cc   : > { %v1599_v37 = vpop.permute.xlu1 %1598 }
 0x3cd   : > { %3408 = vmatmul.mubr.msk.f32.vlgmr.msra.gmra.mrb[16].mxu1 %vm395_vm1, %v1284_v13  ;;  %3436 = vmatmul.mubr.msk.f32.vlgmr.msra.gmra.mrb[16].mxu0 %vm395_vm1, %v1595_v26 }
 0x3ce   : > { %3410 = vmatprep.mubr.msk.f32.mxu1 %vm395_vm1, %v1286_v14  ;;  %3438 = vmatprep.mubr.msk.f32.mxu0 %vm395_vm1, %v1597_v63 }
 0x3d0   : > { %v3913_v40 = vpop.permute.xlu1 %3912 }
 0x3d1   : > { %v3915_v43 = vunpack.i.h.bf16 %v3913_v40  ;;  %v3914_v47 = vunpack.i.l.bf16 %v3913_v40  ;;  %3411 = vmatmul.mubr.msk.f32.gmra.mrb[18].mxu1 %vm395_vm1, %v1288_v32  ;;  %3439 = vmatmul.mubr.msk.f32.gmra.mrb[18].mxu0 %vm395_vm1, %v1599_v37 }
 0x3d3   : > { %v3649_v49 = vpack.c.bf16 %v3915_v43, %v3914_v47 }
 0x3d5   : > { %3650 = vmatprep.subr.bf16.mxu1 %v3649_v49 }
 0x3d6   : > { %3652 = vmatpush3.bf16.msra.mxu1 %v3649_v49 }
 0x3d7   : > { %3654 = vmatprep.subr.bf16.mxu1 %v3653_v51 }
 0x3da   : > { %3656 = vmatpush3.bf16.msra.mxu1 %v3653_v51 }
 0x431   : > { %v4793_v55 = vpop.f32.mrb[4].mxu1 }
 0x432   : > { %5324 = vst [vmem:[#allocation14_spill] sm:$0xff] %v4793_v55  ;;  %v4795_v56 = vpop.f32.mrb[5].mxu1 }
 0x43d   : > { %v4797_v57 = vpop.f32.mrb[6].mxu1 }
 0x43e   : > { %5325 = vst [vmem:[#allocation15_spill] sm:$0xff] %v4797_v57  ;;  %v4799_v60 = vpop.f32.mrb[7].mxu1 }
 0x43f   : > { %5326 = vst [vmem:[#allocation16_spill] sm:$0xff] %v4799_v60 }
 0x441   : > { %v4801_v62 = vpop.f32.mrb[8].mxu1 }
 0x442   : > { %v4803_v0 = vpop.f32.mrb[9].mxu1 }
 0x445   : > { %v4805_v1 = vpop.f32.mrb[10].mxu1 }
 0x446   : > { %v4807_v2 = vpop.f32.mrb[11].mxu1 }
 0x467   : > { %v4809_v3 = vpop.f32.mrb[12].mxu1 }
 0x468   : > { %v4811_v4 = vpop.f32.mrb[13].mxu1 }
 0x49c   : > { %v4813_v5 = vpop.f32.mrb[14].mxu1 }
 0x49d   : > { %v4815_v6 = vpop.f32.mrb[15].mxu1 }
 0x49e   : > { %5327 = vst [vmem:[#allocation17_spill] sm:$0xff] %v4815_v6 }
 0x4a0   : > { %v3409_v8 = vpop.f32.mrb[16].mxu1  ;;  %v3437_v10 = vpop.f32.mrb[16].mxu0 }
 0x4a1   : > { %v4817_v54 = vmul.f32 0.35355338, %v3437_v10  ;;  %v1379_v59 = vpop.f32.mrb[17].mxu1  ;;  %v1690_v11 = vpop.f32.mrb[17].mxu0  ;;  %v1399_v25 = vmul.f32 0.35355338, %v3409_v8 }
 0x4a2   : > { %v4819_v12 = vmul.f32 0.35355338, %v1690_v11  ;;  %v1398_v22 = vmul.f32 0.35355338, %v1379_v59 }
 0x4a3   : > { %v1716_v13 = vsel %vm501_vm3, %v4817_v54, -inf  ;;  %v1405_v63 = vsel %vm501_vm3, %v1399_v25, -inf }
 0x4a4   : > { %1717 = vmax.xlane.f32.xlu0 %v1716_v13  ;;  %v3412_v14 = vpop.f32.mrb[18].mxu1  ;;  %v3440_v15 = vpop.f32.mrb[18].mxu0  ;;  %v1713_v16 = vsel %vm501_vm3, %v4819_v12, -inf  ;;  %v1402_v32 = vsel %vm501_vm3, %v1398_v22, -inf }
 0x4a5   : > { %v4825_v17 = vmul.f32 0.35355338, %v3440_v15  ;;  %1714 = vmax.xlane.f32.xlu1 %v1713_v16  ;;  %v1389_v19 = vpop.f32.mrb[19].mxu1  ;;  %v1700_v20 = vpop.f32.mrb[19].mxu0  ;;  %v1401_v30 = vmul.f32 0.35355338, %v3412_v14 }
 0x4a6   : > { %v4827_v21 = vmul.f32 0.35355338, %v1700_v20  ;;  %v1400_v26 = vmul.f32 0.35355338, %v1389_v19 }
 0x4a7   : > { %v1722_v24 = vsel %vm501_vm3, %v4825_v17, -inf  ;;  %v1411_v37 = vsel %vm501_vm3, %v1401_v30, -inf }
 0x4a8   : > { %1723 = vmax.xlane.f32.xlu0 %v1722_v24  ;;  %v1719_v27 = vsel %vm501_vm3, %v4827_v21, -inf  ;;  %v1408_v39 = vsel %vm501_vm3, %v1400_v26, -inf }
 0x4a9   : > { %1720 = vmax.xlane.f32.xlu1 %v1719_v27 }
 0x4ac   : > { %1403 = vmax.xlane.f32.xlu0 %v1402_v32 }
 0x4ad   : > { %1406 = vmax.xlane.f32.xlu1 %v1405_v63 }
 0x4b0   : > { %1412 = vmax.xlane.f32.xlu0 %v1411_v37 }
 0x4b4   : > { %1409 = vmax.xlane.f32.xlu0 %v1408_v39 }
 0x4be   : > { %3922 = vrot.lane.b32.xlu1 %v4582_v46, %s4293_s27 }
 0x4c2   : > { %3932 = vrot.lane.b32.xlu1 %v4540_v33, %s4294_s20 }
 0x4c6   : > { %3937 = vrot.lane.b32.xlu1 %v4555_v38, %s4294_s20 }
 0x4ca   : > { %1905 = vrot.lane.b32.xlu1 %v4535_v31, %s4295_s29  ;;  %3927 = vrot.lane.b32.xlu0 %v4575_v45, %s4293_s27  ;;  %s4300_s27 = smov [#allocation10]  }
 0x4ce   : > { %1909 = vrot.lane.b32.xlu1 %v4550_v36, %s4295_s29  ;;  %1903 = vrot.lane.b32.xlu0 %v4529_v29, %s4295_s29 }
 0x4d2   : > { %3942 = vrot.lane.b32.xlu1 %v4582_v46, %s4295_s29  ;;  %1907 = vrot.lane.b32.xlu0 %v4544_v34, %s4295_s29 }
 0x531   : > { %v1718_v33 = vpop.xlane.xlu0 %1717 }
 0x532   : > { %v1715_v38 = vpop.xlane.xlu1 %1714  ;;  %v1726_v16 = vsub.f32 %v4817_v54, %v1718_v33 }
 0x533   : > { %v1725_v11 = vsub.f32 %v4819_v12, %v1715_v38 }
 0x534   : > { %v1731_v63 = vmul.f32 1.442695, %v1726_v16 }
 0x535   : > { %v1724_v40 = vpop.xlane.xlu0 %1723  ;;  %v1729_v20 = vmul.f32 1.442695, %v1725_v11 }
 0x536   : > { %v1721_v41 = vpop.xlane.xlu1 %1720  ;;  %v1728_v12 = vsub.f32 %v4825_v17, %v1724_v40 }
 0x539   : > { %v1404_v31 = vpop.xlane.xlu0 %1403 }
 0x53a   : > { %v1414_v42 = vsub.f32 %v1398_v22, %v1404_v31  ;;  %v1407_v43 = vpop.xlane.xlu1 %1406  ;;  %v1727_v22 = vsub.f32 %v4827_v21, %v1721_v41  ;;  %v1735_v41 = vmul.f32 1.442695, %v1728_v12 }
 0x53b   : > { %v1415_v47 = vsub.f32 %v1399_v25, %v1407_v43 }
 0x53c   : > { %v1418_v49 = vmul.f32 1.442695, %v1414_v42 }
 0x53d   : > { %v1420_v51 = vmul.f32 1.442695, %v1415_v47  ;;  %v1413_v36 = vpop.xlane.xlu0 %1412 }
 0x53e   : > { %4015 = vpow2.f32 %v1418_v49  ;;  %v3923_v8 = vpop.permute.xlu1 %3922  ;;  %v1417_v29 = vsub.f32 %v1401_v30, %v1413_v36 }
 0x53f   : > { %4017 = vpow2.f32 %v1420_v51  ;;  %v3925_v10 = vunpack.i.h.bf16 %v3923_v8  ;;  %v3924_v59 = vunpack.i.l.bf16 %v3923_v8 }
 0x540   : > { %v1424_v19 = vmul.f32 1.442695, %v1417_v29 }
 0x541   : > { %v1410_v34 = vpop.xlane.xlu0 %1409  ;;  %v3669_v13 = vpack.c.bf16 %v3925_v10, %v3924_v59 }
 0x542   : > { %v1416_v14 = vsub.f32 %v1400_v26, %v1410_v34  ;;  %v3933_v15 = vpop.permute.xlu1 %3932  ;;  %v1733_v26 = vmul.f32 1.442695, %v1727_v22 }
 0x543   : > { %3670 = vmatprep.subr.bf16.mxu1 %v3669_v13  ;;  %v3935_v21 = vunpack.i.h.bf16 %v3933_v15  ;;  %v3934_v33 = vunpack.i.l.bf16 %v3933_v15 }
 0x544   : > { %v1422_v24 = vmul.f32 1.442695, %v1416_v14 }
 0x545   : > { %v3928_v25 = vpop.permute.xlu0 %3927  ;;  %v3677_v17 = vpack.c.bf16 %v3935_v21, %v3934_v33 }
 0x546   : > { %4019 = vpow2.f32 %v1422_v24  ;;  %v3930_v27 = vunpack.i.h.bf16 %v3928_v25  ;;  %v3929_v30 = vunpack.i.l.bf16 %v3928_v25  ;;  %v3938_v32 = vpop.permute.xlu1 %3937 }
 0x547   : > { %4021 = vpow2.f32 %v1424_v19  ;;  %v3940_v49 = vunpack.i.h.bf16 %v3938_v32  ;;  %v3939_v51 = vunpack.i.l.bf16 %v3938_v32 }
 0x548   : > { %v4859_v37 = vpop.eup %4015  ;;  %4023 = vpow2.f32 %v1729_v20  ;;  %v3673_v54 = vpack.c.bf16 %v3930_v27, %v3929_v30 }
 0x549   : > { %v4861_v39 = vpop.eup %4017  ;;  %3421 = vmatprep.mubr.msk.f32.mxu1 %vm501_vm3, %v4859_v37  ;;  %4025 = vpow2.f32 %v1731_v63  ;;  %v3683_v11 = vpack.c.bf16 %v3940_v49, %v3939_v51  ;;  %v4925_v49 = vld [vmem:[#allocation2] sm:$0xff] }
 0x54a   : > { %v1906_v38 = vpop.permute.xlu1 %1905  ;;  %3422 = vmatmul.mubr.msk.f32.vlgmr.msra.gmra.mrb[20].mxu1 %vm501_vm3, %v4861_v39  ;;  %4027 = vpow2.f32 %v1733_v26 }
 0x54b   : > { %3672 = vmatpush3.bf16.msra.mxu1 %v3669_v13  ;;  %4029 = vpow2.f32 %v1735_v41  ;;  %v1904_v13 = vpop.permute.xlu0 %1903 }
 0x54c   : > { %3674 = vmatprep.subr.bf16.mxu1 %v3673_v54 }
 0x54e   : > { %v1910_v40 = vpop.permute.xlu1 %1909 }
 0x54f   : > { %3676 = vmatpush3.bf16.msra.mxu1 %v3673_v54  ;;  %v1908_v14 = vpop.permute.xlu0 %1907 }
 0x550   : > { %v4867_v31 = vpop.eup %4019  ;;  %3679 = vmatprep.subr.msk.bf16.mxu1 %vm4589_vm2, %v3677_v17 }
 0x551   : > { %v4871_v42 = vpop.eup %4021  ;;  %3424 = vmatprep.mubr.msk.f32.mxu1 %vm501_vm3, %v4867_v31 }
 0x552   : > { %v4875_v43 = vpop.eup %4023  ;;  %v3943_v47 = vpop.permute.xlu1 %3942  ;;  %3425 = vmatmul.mubr.msk.f32.gmra.mrb[22].mxu1 %vm501_vm3, %v4871_v42 }
 0x553   : > { %v3945_v36 = vunpack.i.h.bf16 %v3943_v47  ;;  %v3944_v8 = vunpack.i.l.bf16 %v3943_v47  ;;  %3449 = vmatprep.mubr.msk.f32.mxu1 %vm501_vm3, %v4875_v43  ;;  %v4881_v29 = vpop.eup %4025  ;;  %v4923_v47 = vld [vmem:[#allocation2 + $0x10] sm:$0xff] }
 0x554   : > { %v4883_v59 = vpop.eup %4027  ;;  %v4929_v51 = vpack.i.bf16 %v4923_v47, %v4925_v49 }
 0x555   : > { %v3689_v10 = vpack.c.bf16 %v3945_v36, %v3944_v8  ;;  %v4891_v34 = vpop.eup %4029  ;;  %v4931_v36 = vld [vmem:[#allocation2 + $0x30] sm:$0xff]  ;;  %v4935_v8 = vld [vmem:[#allocation2 + $0x20] sm:$0xff] }
 0x556   : > { %3450 = vmatmul.mubr.msk.f32.vlgmr.msra.gmra.mrb[24].mxu1 %vm501_vm3, %v4881_v29 }
 0x557   : > { %3452 = vmatprep.mubr.msk.f32.mxu1 %vm501_vm3, %v4883_v59  ;;  %3690 = vmatprep.subr.bf16.mxu0 %v3689_v10 }
 0x558   : > { %3682 = vmatpush3.bf16.xpose.msk.msra.mxu1 %vm4589_vm2, %v3677_v17  ;;  %3692 = vmatpush3.bf16.msra.mxu0 %v3689_v10  ;;  %v4939_v10 = vpack.i.bf16 %v4931_v36, %v4935_v8 }
 0x559   : > { %3685 = vmatprep.subr.msk.bf16.mxu1 %vm4589_vm2, %v3683_v11 }
 0x55a   : > { %3453 = vmatmul.mubr.msk.f32.gmra.mrb[26].mxu1 %vm501_vm3, %v4891_v34 }
 0x55b   : > { %3463 = vmatprep.mubr.msk.f32.mxu1 %vm395_vm1, %v1904_v13 }
 0x560   : > { %3688 = vmatpush3.bf16.xpose.msk.msra.mxu1 %vm4589_vm2, %v3683_v11 }
 0x567   : > { %3464 = vmatmul.mubr.msk.f32.vlgmr.msra.gmra.mrb[28].mxu1 %vm395_vm1, %v1906_v38 }
 0x568   : > { %3466 = vmatprep.mubr.msk.f32.mxu1 %vm395_vm1, %v1908_v14 }
 0x56b   : > { %3467 = vmatmul.mubr.msk.f32.gmra.mrb[30].mxu1 %vm395_vm1, %v1910_v40 }
 0x61d   : > { %v4903_v15 = vpop.f32.mrb[20].mxu1 }
 0x61e   : > { %v4905_v16 = vpop.f32.mrb[21].mxu1 }
 0x625   : > { %v4907_v19 = vpop.f32.mrb[22].mxu1 }
 0x626   : > { %v4909_v20 = vpop.f32.mrb[23].mxu1 }
 0x627   : > { %5328 = vst [vmem:[#allocation18_spill] sm:$0xff] %v4909_v20 }
 0x629   : > { %v4911_v22 = vpop.f32.mrb[24].mxu1 }
 0x62a   : > { %v4913_v24 = vpop.f32.mrb[25].mxu1 }
 0x62d   : > { %v4915_v25 = vpop.f32.mrb[26].mxu1 }
 0x62e   : > { %5329 = vst [vmem:[#allocation19_spill] sm:$0xff] %v4915_v25  ;;  %v4917_v27 = vpop.f32.mrb[27].mxu1 }
 0x62f   : > { %5330 = vst [vmem:[#allocation20_spill] sm:$0xff] %v4917_v27 }
 0x63a   : > { %v3465_v30 = vpop.f32.mrb[28].mxu1 }
 0x63b   : > { %v2021_v32 = vmul.f32 0.35355338, %v3465_v30  ;;  %v2001_v63 = vpop.f32.mrb[29].mxu1 }
 0x63c   : > { %v2020_v12 = vmul.f32 0.35355338, %v2001_v63 }
 0x63d   : > { %v2027_v26 = vsel %vm501_vm3, %v2021_v32, -inf }
 0x63e   : > { %2028 = vmax.xlane.f32.xlu1 %v2027_v26  ;;  %v3468_v54 = vpop.f32.mrb[30].mxu1  ;;  %v2024_v21 = vsel %vm501_vm3, %v2020_v12, -inf }
 0x63f   : > { %v2023_v33 = vmul.f32 0.35355338, %v3468_v54  ;;  %2025 = vmax.xlane.f32.xlu0 %v2024_v21  ;;  %v2011_v38 = vpop.f32.mrb[31].mxu1 }
 0x640   : > { %v2022_v17 = vmul.f32 0.35355338, %v2011_v38 }
 0x641   : > { %v2033_v41 = vsel %vm501_vm3, %v2023_v33, -inf }
 0x642   : > { %v2030_v40 = vsel %vm501_vm3, %v2022_v17, -inf }
 0x643   : > { %2034 = vmax.xlane.f32.xlu0 %v2033_v41 }
 0x647   : > { %2031 = vmax.xlane.f32.xlu0 %v2030_v40 }
 0x64f   : > { %3952 = vrot.lane.b32.xlu1 %v4929_v51, %s4296_s5 }
 0x653   : > { %3957 = vrot.lane.b32.xlu1 %v4939_v10, %s4296_s5 }
 0x657   : > { %2216 = vrot.lane.b32.xlu1 %v4923_v47, %s4297_s12 }
 0x65b   : > { %2220 = vrot.lane.b32.xlu1 %v4931_v36, %s4297_s12 }
 0x65d   : > { %3947 = vrot.lane.b32.xlu0 %v4575_v45, %s4295_s29 }
 0x65f   : > { %3962 = vrot.lane.b32.xlu1 %v4582_v46, %s4297_s12 }
 0x661   : > { %2214 = vrot.lane.b32.xlu0 %v4925_v49, %s4297_s12 }
 0x665   : > { %2218 = vrot.lane.b32.xlu0 %v4935_v8, %s4297_s12 }
 0x6cb   : > { %v2029_v11 = vpop.xlane.xlu1 %2028 }
 0x6cc   : > { %v2026_v13 = vpop.xlane.xlu0 %2025  ;;  %v2037_v30 = vsub.f32 %v2021_v32, %v2029_v11 }
 0x6cd   : > { %v2036_v14 = vsub.f32 %v2020_v12, %v2026_v13 }
 0x6ce   : > { %v2042_v21 = vmul.f32 1.442695, %v2037_v30 }
 0x6cf   : > { %v2040_v63 = vmul.f32 1.442695, %v2036_v14  ;;  %v3953_v26 = vpop.permute.xlu1 %3952 }
 0x6d0   : > { %v2035_v54 = vpop.xlane.xlu0 %2034  ;;  %v3955_v60 = vunpack.i.h.bf16 %v3953_v26  ;;  %v3954_v27 = vunpack.i.l.bf16 %v3953_v26 }
 0x6d1   : > { %4031 = vpow2.f32 %v2040_v63  ;;  %v2039_v38 = vsub.f32 %v2023_v33, %v2035_v54 }
 0x6d2   : > { %4033 = vpow2.f32 %v2042_v21  ;;  %v3697_v33 = vpack.c.bf16 %v3955_v60, %v3954_v27 }
 0x6d3   : > { %v3958_v45 = vpop.permute.xlu1 %3957  ;;  %v2046_v46 = vmul.f32 1.442695, %v2039_v38 }
 0x6d4   : > { %v2032_v41 = vpop.xlane.xlu0 %2031 }
 0x6d5   : > { %v2038_v40 = vsub.f32 %v2022_v17, %v2032_v41 }
 0x6d7   : > { %v2044_v57 = vmul.f32 1.442695, %v2038_v40  ;;  %v2217_v55 = vpop.permute.xlu1 %2216 }
 0x6d8   : > { %v3948_v25 = vpop.permute.xlu0 %3947 }
 0x6d9   : > { %4035 = vpow2.f32 %v2044_v57  ;;  %v3950_v20 = vunpack.i.h.bf16 %v3948_v25  ;;  %v3949_v12 = vunpack.i.l.bf16 %v3948_v25  ;;  %v3960_v25 = vunpack.i.h.bf16 %v3958_v45 }
 0x6da   : > { %4037 = vpow2.f32 %v2046_v46 }
 0x6db   : > { %v4955_v32 = vpop.eup %4031  ;;  %v3693_v11 = vpack.c.bf16 %v3950_v20, %v3949_v12  ;;  %v2221_v13 = vpop.permute.xlu1 %2220  ;;  %v3959_v20 = vunpack.i.l.bf16 %v3958_v45 }
 0x6dc   : > { %3477 = vmatprep.mubr.msk.f32.mxu0 %vm501_vm3, %v4955_v32  ;;  %v4961_v14 = vpop.eup %4033  ;;  %v2215_v60 = vpop.permute.xlu0 %2214 }
 0x6dd   : > { %3694 = vmatprep.subr.bf16.mxu0 %v3693_v11  ;;  %v3703_v27 = vpack.c.bf16 %v3960_v25, %v3959_v20 }
 0x6de   : > { %3696 = vmatpush3.bf16.msra.mxu0 %v3693_v11 }
 0x6df   : > { %v3963_v17 = vpop.permute.xlu1 %3962  ;;  %3699 = vmatprep.subr.msk.bf16.mxu0 %vm4589_vm2, %v3697_v33 }
 0x6e0   : > { %v3965_v57 = vunpack.i.h.bf16 %v3963_v17  ;;  %v3964_v30 = vunpack.i.l.bf16 %v3963_v17  ;;  %v2219_v21 = vpop.permute.xlu0 %2218 }
 0x6e1   : > { %3478 = vmatmul.mubr.msk.f32.vlgmr.msra.gmra.mrb[20].mxu0 %vm501_vm3, %v4961_v14 }
 0x6e2   : > { %v3709_v63 = vpack.c.bf16 %v3965_v57, %v3964_v30 }
 0x6e3   : > { %v4965_v26 = vpop.eup %4035 }
 0x6e4   : > { %v4967_v54 = vpop.eup %4037  ;;  %3480 = vmatprep.mubr.msk.f32.mxu0 %vm501_vm3, %v4965_v26  ;;  %3710 = vmatprep.subr.bf16.mxu1 %v3709_v63 }
 0x6e5   : > { %3481 = vmatmul.mubr.msk.f32.gmra.mrb[22].mxu0 %vm501_vm3, %v4967_v54  ;;  %3712 = vmatpush3.bf16.msra.mxu1 %v3709_v63 }
 0x6e6   : > { %3491 = vmatprep.mubr.msk.f32.mxu0 %vm395_vm1, %v2215_v60  ;;  %v2209_v60 = vld [vmem:[#allocation2 + $0x38] sm:$0xff] }
 0x6e7   : > { %3702 = vmatpush3.bf16.xpose.msk.msra.mxu0 %vm4589_vm2, %v3697_v33 }
 0x6e8   : > { %3705 = vmatprep.subr.msk.bf16.mxu0 %vm4589_vm2, %v3703_v27 }
 0x6ef   : > { %3708 = vmatpush3.bf16.xpose.msk.msra.mxu0 %vm4589_vm2, %v3703_v27  ;;  %v2208_v27 = vld [vmem:[#allocation2 + $0x28] sm:$0xff] }
 0x6f6   : > { %3492 = vmatmul.mubr.msk.f32.vlgmr.msra.gmra.mrb[24].mxu0 %vm395_vm1, %v2217_v55 }
 0x6f7   : > { %3494 = vmatprep.mubr.msk.f32.mxu0 %vm395_vm1, %v2219_v21  ;;  %v5003_v21 = vpack.i.bf16 %v2209_v60, %v2208_v27 }
 0x6fa   : > { %3495 = vmatmul.mubr.msk.f32.gmra.mrb[26].mxu0 %vm395_vm1, %v2221_v13 }
 0x7b4   : > { %v4983_v38 = vpop.f32.mrb[20].mxu0 }
 0x7b5   : > { %v4985_v45 = vpop.f32.mrb[21].mxu0 }
 0x7b8   : > { %v4987_v41 = vpop.f32.mrb[22].mxu0 }
 0x7b9   : > { %5331 = vst [vmem:[#allocation21_spill] sm:$0xff] %v4987_v41  ;;  %v4989_v40 = vpop.f32.mrb[23].mxu0 }
 0x7c9   : > { %v3493_v46 = vpop.f32.mrb[24].mxu0 }
 0x7ca   : > { %v2332_v12 = vmul.f32 0.35355338, %v3493_v46  ;;  %v2312_v11 = vpop.f32.mrb[25].mxu0 }
 0x7cb   : > { %v2331_v33 = vmul.f32 0.35355338, %v2312_v11 }
 0x7cc   : > { %v2338_v17 = vsel %vm501_vm3, %v2332_v12, -inf }
 0x7cd   : > { %2339 = vmax.xlane.f32.xlu1 %v2338_v17  ;;  %v3496_v55 = vpop.f32.mrb[26].mxu0  ;;  %v2335_v57 = vsel %vm501_vm3, %v2331_v33, -inf }
 0x7ce   : > { %v2334_v30 = vmul.f32 0.35355338, %v3496_v55  ;;  %2336 = vmax.xlane.f32.xlu0 %v2335_v57  ;;  %v2322_v13 = vpop.f32.mrb[27].mxu0 }
 0x7cf   : > { %v2333_v20 = vmul.f32 0.35355338, %v2322_v13 }
 0x7d0   : > { %v2344_v25 = vsel %vm501_vm3, %v2334_v30, -inf }
 0x7d1   : > { %v2341_v63 = vsel %vm501_vm3, %v2333_v20, -inf }
 0x7d2   : > { %2345 = vmax.xlane.f32.xlu0 %v2344_v25 }
 0x7d6   : > { %2342 = vmax.xlane.f32.xlu0 %v2341_v63 }
 0x7de   : > { %3972 = vrot.lane.b32.xlu1 %v4929_v51, %s4298_s24 }
 0x7e2   : > { %3977 = vrot.lane.b32.xlu1 %v4939_v10, %s4298_s24 }
 0x7e6   : > { %2527 = vrot.lane.b32.xlu1 %v4923_v47, %s4299_s25 }
 0x7ea   : > { %2531 = vrot.lane.b32.xlu1 %v4931_v36, %s4299_s25 }
 0x7ec   : > { %3967 = vrot.lane.b32.xlu0 %v5003_v21, %s4297_s12 }
 0x7f0   : > { %2525 = vrot.lane.b32.xlu0 %v4925_v49, %s4299_s25 }
 0x7f4   : > { %2529 = vrot.lane.b32.xlu0 %v4935_v8, %s4299_s25 }
 0x85a   : > { %v2340_v51 = vpop.xlane.xlu1 %2339 }
 0x85b   : > { %v2337_v10 = vpop.xlane.xlu0 %2336  ;;  %v2348_v47 = vsub.f32 %v2332_v12, %v2340_v51 }
 0x85c   : > { %v2347_v46 = vsub.f32 %v2331_v33, %v2337_v10 }
 0x85d   : > { %v2353_v55 = vmul.f32 1.442695, %v2348_v47 }
 0x85e   : > { %v2351_v11 = vmul.f32 1.442695, %v2347_v46  ;;  %v3973_v13 = vpop.permute.xlu1 %3972 }
 0x85f   : > { %v2346_v17 = vpop.xlane.xlu0 %2345  ;;  %v3975_v27 = vunpack.i.h.bf16 %v3973_v13  ;;  %v3974_v41 = vunpack.i.l.bf16 %v3973_v13 }
 0x860   : > { %4039 = vpow2.f32 %v2351_v11  ;;  %v2350_v36 = vsub.f32 %v2334_v30, %v2346_v17 }
 0x861   : > { %4041 = vpow2.f32 %v2353_v55  ;;  %v3717_v30 = vpack.c.bf16 %v3975_v27, %v3974_v41 }
 0x862   : > { %v2357_v63 = vmul.f32 1.442695, %v2350_v36 }
 0x863   : > { %v2343_v57 = vpop.xlane.xlu0 %2342 }
 0x864   : > { %v2349_v25 = vsub.f32 %v2333_v20, %v2343_v57  ;;  %v3978_v20 = vpop.permute.xlu1 %3977 }
 0x865   : > { %v3980_v10 = vunpack.i.h.bf16 %v3978_v20  ;;  %v3979_v46 = vunpack.i.l.bf16 %v3978_v20 }
 0x866   : > { %v2355_v60 = vmul.f32 1.442695, %v2349_v25 }
 0x867   : > { %v3968_v49 = vpop.permute.xlu0 %3967  ;;  %v3723_v11 = vpack.c.bf16 %v3980_v10, %v3979_v46 }
 0x868   : > { %4043 = vpow2.f32 %v2355_v60  ;;  %v3970_v8 = vunpack.i.h.bf16 %v3968_v49  ;;  %v3969_v6 = vunpack.i.l.bf16 %v3968_v49  ;;  %v2528_v17 = vpop.permute.xlu1 %2527 }
 0x869   : > { %4045 = vpow2.f32 %v2357_v63 }
 0x86a   : > { %v5011_v33 = vpop.eup %4039  ;;  %v3713_v12 = vpack.c.bf16 %v3970_v8, %v3969_v6 }
 0x86b   : > { %3505 = vmatprep.mubr.msk.f32.mxu1 %vm501_vm3, %v5011_v33  ;;  %v5017_v51 = vpop.eup %4041  ;;  %v2526_v41 = vpop.permute.xlu0 %2525 }
 0x86c   : > { %3714 = vmatprep.subr.bf16.mxu1 %v3713_v12  ;;  %v2532_v36 = vpop.permute.xlu1 %2531 }
 0x86d   : > { %3716 = vmatpush3.bf16.msra.mxu1 %v3713_v12 }
 0x86e   : > { %3719 = vmatprep.subr.msk.bf16.mxu1 %vm4589_vm2, %v3717_v30 }
 0x86f   : > { %v2530_v55 = vpop.permute.xlu0 %2529 }
 0x870   : > { %3506 = vmatmul.mubr.msk.f32.vlgmr.msra.gmra.mrb[32].mxu1 %vm501_vm3, %v5017_v51 }
 0x872   : > { %v5021_v47 = vpop.eup %4043 }
 0x873   : > { %v5023_v6 = vpop.eup %4045  ;;  %3508 = vmatprep.mubr.msk.f32.mxu1 %vm501_vm3, %v5021_v47 }
 0x874   : > { %3509 = vmatmul.mubr.msk.f32.gmra.mrb[34].mxu1 %vm501_vm3, %v5023_v6 }
 0x875   : > { %3519 = vmatprep.mubr.msk.f32.mxu1 %vm395_vm1, %v2526_v41 }
 0x876   : > { %3722 = vmatpush3.bf16.xpose.msk.msra.mxu1 %vm4589_vm2, %v3717_v30 }
 0x877   : > { %3725 = vmatprep.subr.msk.bf16.mxu1 %vm4589_vm2, %v3723_v11 }
 0x87e   : > { %3728 = vmatpush3.bf16.xpose.msk.msra.mxu1 %vm4589_vm2, %v3723_v11 }
 0x885   : > { %3520 = vmatmul.mubr.msk.f32.vlgmr.msra.gmra.mrb[36].mxu1 %vm395_vm1, %v2528_v17  ;;  %v2518_v17 = vld [vmem:[#allocation2 + $0x18] sm:$0xff] }
 0x886   : > { %3522 = vmatprep.mubr.msk.f32.mxu1 %vm395_vm1, %v2530_v55  ;;  %v2517_v55 = vld [vmem:[#allocation2 + $0x8] sm:$0xff] }
 0x889   : > { %3523 = vmatmul.mubr.msk.f32.gmra.mrb[38].mxu1 %vm395_vm1, %v2532_v36  ;;  %v3981_v36 = vpack.i.bf16 %v2518_v17, %v2517_v55 }
 0x943   : > { %v5039_v57 = vpop.f32.mrb[32].mxu1 }
 0x944   : > { %v5041_v13 = vpop.f32.mrb[33].mxu1 }
 0x947   : > { %v5043_v25 = vpop.f32.mrb[34].mxu1 }
 0x948   : > { %v5045_v63 = vpop.f32.mrb[35].mxu1 }
 0x958   : > { %v3521_v60 = vpop.f32.mrb[36].mxu1 }
 0x959   : > { %v5047_v50 = vmul.f32 0.35355338, %v3521_v60  ;;  %v2623_v27 = vpop.f32.mrb[37].mxu1  ;;  %v804_v60 = vsel %vm501_vm3, %v4731_v18, 0.0  ;;  %v1118_v18 = vsel %vm501_vm3, %v4755_v9, 0.0  ;;  %v2051_v9 = vsel %vm501_vm3, %v4961_v14, 0.0 }
 0x95a   : > { %v5049_v49 = vmul.f32 0.35355338, %v2623_v27  ;;  %v1115_v27 = vsel %vm501_vm3, %v4753_v7, 0.0  ;;  %v1740_v7 = vsel %vm501_vm3, %v4881_v29, 0.0  ;;  %v2048_v29 = vsel %vm501_vm3, %v4955_v32, 0.0 }
 0x95b   : > { %v2649_v8 = vsel %vm501_vm3, %v5047_v50, -inf  ;;  %v2359_v14 = vsel %vm501_vm3, %v5011_v33, 0.0  ;;  %v1435_v32 = vsel %vm501_vm3, %v4871_v42, 0.0  ;;  %v2365_v33 = vsel %vm501_vm3, %v5021_v47, 0.0 }
 0x95c   : > { %2650 = vmax.xlane.f32.xlu1 %v2649_v8  ;;  %v3524_v12 = vpop.f32.mrb[38].mxu1  ;;  %v2646_v30 = vsel %vm501_vm3, %v5049_v49, -inf  ;;  %v1426_v8 = vsel %vm501_vm3, %v4859_v37, 0.0  ;;  %v1429_v37 = vsel %vm501_vm3, %v4861_v39, 0.0  ;;  %v1124_v39 = vsel %vm501_vm3, %v4780_v35, 0.0 }
 0x95d   : > { %v5055_v20 = vmul.f32 0.35355338, %v3524_v12  ;;  %2647 = vmax.xlane.f32.xlu0 %v2646_v30  ;;  %v2633_v10 = vpop.f32.mrb[39].mxu1  ;;  %v807_v12 = vsel %vm501_vm3, %v4737_v52, 0.0  ;;  %v1737_v30 = vsel %vm501_vm3, %v4875_v43, 0.0  ;;  %v813_v52 = vsel %vm501_vm3, %v4745_v58, 0.0 }
 0x95e   : > { %v5059_v41 = vmul.f32 0.35355338, %v2633_v10  ;;  %v810_v43 = vsel %vm501_vm3, %v4739_v53, 0.0  ;;  %v1121_v58 = vsel %vm501_vm3, %v4778_v61, 0.0  ;;  %v2362_v53 = vsel %vm501_vm3, %v5017_v51, 0.0 }
 0x95f   : > { %v2655_v46 = vsel %vm501_vm3, %v5055_v20, -inf  ;;  %v1432_v35 = vsel %vm501_vm3, %v4867_v31, 0.0  ;;  %v2054_v61 = vsel %vm501_vm3, %v4965_v26, 0.0  ;;  %v1746_v42 = vsel %vm501_vm3, %v4891_v34, 0.0 }
 0x960   : > { %v2652_v11 = vsel %vm501_vm3, %v5059_v41, -inf  ;;  %v526_v31 = vsel %vm501_vm3, %v4714_v23, 0.0  ;;  %v2057_v26 = vsel %vm501_vm3, %v4967_v54, 0.0 }
 0x961   : > { %2656 = vmax.xlane.f32.xlu0 %v2655_v46 }
 0x965   : > { %2653 = vmax.xlane.f32.xlu0 %v2652_v11 }
 0x96d   : > { %3982 = vrot.lane.b32.xlu1 %v3981_v36, %s4299_s25 }
 0x97b   : > { %3987 = vrot.lane.b32.xlu0 %v5003_v21, %s4299_s25  ;;  %v1743_v21 = vsel %vm501_vm3, %v4883_v59, 0.0  ;;  %v2368_v59 = vsel %vm501_vm3, %v5023_v6, 0.0 }
 0x991   : > { %805 = vadd.xlane.f32.xlu1 %v804_v60 }
 0x995   : > { %1116 = vadd.xlane.f32.xlu1 %v1115_v27 }
 0x999   : > { %1427 = vadd.xlane.f32.xlu1 %v1426_v8 }
 0x99a   : > { %808 = vadd.xlane.f32.xlu0 %v807_v12 }
 0x99d   : > { %1738 = vadd.xlane.f32.xlu1 %v1737_v30 }
 0x99e   : > { %1119 = vadd.xlane.f32.xlu0 %v1118_v18 }
 0x9a1   : > { %1741 = vadd.xlane.f32.xlu1 %v1740_v7 }
 0x9a2   : > { %1430 = vadd.xlane.f32.xlu0 %v1429_v37 }
 0x9a5   : > { %814 = vadd.xlane.f32.xlu1 %v813_v52 }
 0x9a6   : > { %811 = vadd.xlane.f32.xlu0 %v810_v43  ;;  %v532_v43 = vsel %vm501_vm3, %v4725_v44, 0.0  ;;  %v535_v44 = vsel %vm501_vm3, %v4727_v48, 0.0 }
 0x9a9   : > { %2052 = vadd.xlane.f32.xlu1 %v2051_v9 }
 0x9aa   : > { %2049 = vadd.xlane.f32.xlu0 %v2048_v29 }
 0x9ad   : > { %1125 = vadd.xlane.f32.xlu1 %v1124_v39  ;;  %v529_v39 = vsel %vm501_vm3, %v4717_v28, 0.0 }
 0x9ae   : > { %1122 = vadd.xlane.f32.xlu0 %v1121_v58 }
 0x9b1   : > { %2363 = vadd.xlane.f32.xlu1 %v2362_v53 }
 0x9b2   : > { %2360 = vadd.xlane.f32.xlu0 %v2359_v14 }
 0x9b5   : > { %1436 = vadd.xlane.f32.xlu1 %v1435_v32 }
 0x9b6   : > { %1433 = vadd.xlane.f32.xlu0 %v1432_v35 }
 0x9b9   : > { %2055 = vadd.xlane.f32.xlu1 %v2054_v61 }
 0x9ba   : > { %1744 = vadd.xlane.f32.xlu0 %v1743_v21 }
 0x9bd   : > { %2366 = vadd.xlane.f32.xlu1 %v2365_v33 }
 0x9be   : > { %1747 = vadd.xlane.f32.xlu0 %v1746_v42 }
 0x9c1   : > { %527 = vadd.xlane.f32.xlu1 %v526_v31 }
 0x9c2   : > { %2058 = vadd.xlane.f32.xlu0 %v2057_v26 }
 0x9c6   : > { %2369 = vadd.xlane.f32.xlu0 %v2368_v59 }
 0x9e9   : > { %v2651_v51 = vpop.xlane.xlu1 %2650 }
 0x9ea   : > { %v2659_v47 = vsub.f32 %v5047_v50, %v2651_v51  ;;  %v2648_v10 = vpop.xlane.xlu0 %2647 }
 0x9eb   : > { %v2658_v46 = vsub.f32 %v5049_v49, %v2648_v10 }
 0x9ec   : > { %v2664_v34 = vmul.f32 1.442695, %v2659_v47 }
 0x9ed   : > { %v2662_v11 = vmul.f32 1.442695, %v2658_v46  ;;  %v3983_v17 = vpop.permute.xlu1 %3982 }
 0x9ee   : > { %4047 = vpow2.f32 %v2664_v34  ;;  %v3985_v23 = vunpack.i.h.bf16 %v3983_v17  ;;  %v3984_v55 = vunpack.i.l.bf16 %v3983_v17  ;;  %v2657_v36 = vpop.xlane.xlu0 %2656 }
 0x9ef   : > { %4049 = vpow2.f32 %v2662_v11  ;;  %v2661_v54 = vsub.f32 %v5055_v20, %v2657_v36 }
 0x9f0   : > { %v3729_v60 = vpack.c.bf16 %v3985_v23, %v3984_v55 }
 0x9f1   : > { %v2668_v27 = vmul.f32 1.442695, %v2661_v54 }
 0x9f2   : > { %3730 = vmatprep.subr.bf16.mxu0 %v3729_v60  ;;  %v2654_v6 = vpop.xlane.xlu0 %2653 }
 0x9f3   : > { %4051 = vpow2.f32 %v2668_v27  ;;  %v2660_v50 = vsub.f32 %v5059_v41, %v2654_v6  ;;  %3732 = vmatpush3.bf16.msra.mxu0 %v3729_v60 }
 0x9f5   : > { %v2666_v8 = vmul.f32 1.442695, %v2660_v50 }
 0x9f6   : > { %v3988_v49 = vpop.permute.xlu0 %3987 }
 0x9f7   : > { %4053 = vpow2.f32 %v2666_v8  ;;  %v3990_v12 = vunpack.i.h.bf16 %v3988_v49  ;;  %v3989_v30 = vunpack.i.l.bf16 %v3988_v49 }
 0x9f8   : > { %v4048_v18 = vpop.eup %4047 }
 0x9f9   : > { %v4050_v7 = vpop.eup %4049  ;;  %v3733_v37 = vpack.c.bf16 %v3990_v12, %v3989_v30  ;;  %v2673_v52 = vsel %vm501_vm3, %v4048_v18, 0.0 }
 0x9fa   : > { %2674 = vadd.xlane.f32.xlu1 %v2673_v52  ;;  %3533 = vmatprep.mubr.msk.f32.mxu0 %vm501_vm3, %v4050_v7  ;;  %v2670_v20 = vsel %vm501_vm3, %v4050_v7, 0.0 }
 0x9fb   : > { %2671 = vadd.xlane.f32.xlu0 %v2670_v20  ;;  %3734 = vmatprep.subr.bf16.mxu0 %v3733_v37 }
 0x9fc   : > { %3736 = vmatpush3.bf16.msra.mxu0 %v3733_v37 }
 0x9fd   : > { %v4052_v41 = vpop.eup %4051 }
 0x9fe   : > { %533 = vadd.xlane.f32.xlu1 %v532_v43  ;;  %v2679_v9 = vsel %vm501_vm3, %v4052_v41, 0.0 }
 0x9ff   : > { %2680 = vadd.xlane.f32.xlu0 %v2679_v9  ;;  %3534 = vmatmul.mubr.msk.f32.vlgmr.msra.gmra.mrb[28].mxu0 %vm501_vm3, %v4048_v18 }
 0xa01   : > { %v5127_v29 = vpop.eup %4053 }
 0xa02   : > { %3536 = vmatprep.mubr.msk.f32.mxu0 %vm501_vm3, %v5127_v29  ;;  %v2676_v37 = vsel %vm501_vm3, %v5127_v29, 0.0 }
 0xa03   : > { %530 = vadd.xlane.f32.xlu0 %v529_v39  ;;  %3537 = vmatmul.mubr.msk.f32.gmra.mrb[30].mxu0 %vm501_vm3, %v4052_v41 }
 0xa07   : > { %536 = vadd.xlane.f32.xlu0 %v535_v44 }
 0xa1e   : > { %v806_v58 = vpop.xlane.xlu1 %805 }
 0xa1f   : > { %4055 = vrcp.f32 %v806_v58 }
 0xa22   : > { %v5136_v53 = vpop.xlane.xlu1 %1116 }
 0xa26   : > { %v1428_v14 = vpop.xlane.xlu1 %1427 }
 0xa27   : > { %v809_v32 = vpop.xlane.xlu0 %808 }
 0xa28   : > { %4057 = vrcp.f32 %v809_v32 }
 0xa29   : > { %v4056_v35 = vpop.eup %4055  ;;  %4059 = vrcp.f32 %v1428_v14 }
 0xa2a   : > { %v1739_v61 = vpop.xlane.xlu1 %1738  ;;  %v933_v21 = vmul.f32 %v4056_v35, %v4803_v0 }
 0xa2b   : > { %v1120_v28 = vpop.xlane.xlu0 %1119  ;;  %4061 = vrcp.f32 %v1739_v61  ;;  %v5332_v61 = vld [vmem:[#allocation17_spill] sm:$0xff] }
 0xa2c   : > { %941 = vrot.lane.b32.xlu1 %v933_v21, %s4298_s24 }
 0xa2e   : > { %v1742_v33 = vpop.xlane.xlu1 %1741 }
 0xa2f   : > { %v5140_v42 = vpop.xlane.xlu0 %1430  ;;  %4063 = vrcp.f32 %v1742_v33 }
 0xa32   : > { %v4058_v48 = vpop.eup %4057  ;;  %v815_v31 = vpop.xlane.xlu1 %814 }
 0xa33   : > { %v5142_v26 = vpop.xlane.xlu0 %811  ;;  %v934_v59 = vmul.f32 %v4058_v48, %v4801_v62  ;;  %v4060_v51 = vpop.eup %4059  ;;  %4065 = vrcp.f32 %v815_v31 }
 0xa34   : > { %v1555_v10 = vmul.f32 %v4060_v51, %v4905_v16 }
 0xa35   : > { %943 = vrot.lane.b32.xlu0 %v934_v59, %s4298_s24  ;;  %v4062_v46 = vpop.eup %4061  ;;  %v5335_v59 = vld [vmem:[#allocation19_spill] sm:$0xff] }
 0xa36   : > { %v2053_v47 = vpop.xlane.xlu1 %2052  ;;  %v1866_v17 = vmul.f32 %v4062_v46, %v4913_v24 }
 0xa37   : > { %v5146_v0 = vpop.xlane.xlu0 %2049  ;;  %4067 = vrcp.f32 %v2053_v47 }
 0xa39   : > { %1563 = vrot.lane.b32.xlu0 %v1555_v10, %s4294_s20  ;;  %v4064_v23 = vpop.eup %4063 }
 0xa3a   : > { %v1126_v34 = vpop.xlane.xlu1 %1125  ;;  %v1867_v36 = vmul.f32 %v4064_v23, %v4911_v22 }
 0xa3b   : > { %v5150_v11 = vpop.xlane.xlu0 %1122  ;;  %4069 = vrcp.f32 %v1126_v34  ;;  %v2828_v34 = vld [vmem:[#allocation9] sm:$0xff] }
 0xa3d   : > { %1874 = vrot.lane.b32.xlu0 %v1866_v17, %s4291_s9  ;;  %v4066_v54 = vpop.eup %4065  ;;  %v2830_v17 = vld [vmem:[#allocation9 + $0x10] sm:$0xff] }
 0xa3e   : > { %v2364_v62 = vpop.xlane.xlu1 %2363  ;;  %v936_v27 = vmul.f32 %v4066_v54, %v4805_v1 }
 0xa3f   : > { %v2361_v55 = vpop.xlane.xlu0 %2360  ;;  %4071 = vrcp.f32 %v2364_v62 }
 0xa41   : > { %1876 = vrot.lane.b32.xlu0 %v1867_v36, %s4291_s9  ;;  %v4068_v6 = vpop.eup %4067 }
 0xa42   : > { %v1437_v16 = vpop.xlane.xlu1 %1436  ;;  %v2178_v8 = vmul.f32 %v4068_v6, %v4983_v38  ;;  %v5337_v6 = vld [vmem:[#allocation16_spill] sm:$0xff] }
 0xa43   : > { %v1434_v60 = vpop.xlane.xlu0 %1433  ;;  %4073 = vrcp.f32 %v1437_v16 }
 0xa45   : > { %947 = vrot.lane.b32.xlu0 %v936_v27, %s4298_s24  ;;  %v4070_v49 = vpop.eup %4069 }
 0xa46   : > { %v2056_v24 = vpop.xlane.xlu1 %2055  ;;  %v1247_v30 = vmul.f32 %v4070_v49, %v4813_v5 }
 0xa47   : > { %v1745_v50 = vpop.xlane.xlu0 %1744  ;;  %4075 = vrcp.f32 %v2056_v24 }
 0xa49   : > { %2187 = vrot.lane.b32.xlu0 %v2178_v8, %s4290_s6  ;;  %v4072_v18 = vpop.eup %4071  ;;  %v5338_v8 = vld [vmem:[#allocation14_spill] sm:$0xff] }
 0xa4a   : > { %v2367_v22 = vpop.xlane.xlu1 %2366  ;;  %v2489_v38 = vmul.f32 %v4072_v18, %v5039_v57 }
 0xa4b   : > { %v1748_v12 = vpop.xlane.xlu0 %1747  ;;  %4077 = vrcp.f32 %v2367_v22 }
 0xa4d   : > { %1258 = vrot.lane.b32.xlu0 %v1247_v30, %s4296_s5  ;;  %v4074_v52 = vpop.eup %4073  ;;  %v5339_v30 = vld [vmem:[#allocation15_spill] sm:$0xff] }
 0xa4e   : > { %v528_v1 = vpop.xlane.xlu1 %527  ;;  %v1558_v5 = vmul.f32 %v4074_v52, %v4907_v19 }
 0xa4f   : > { %4079 = vrcp.f32 %v528_v1  ;;  %v2059_v7 = vpop.xlane.xlu0 %2058 }
 0xa50   : > { %2677 = vadd.xlane.f32.xlu1 %v2676_v37  ;;  %4081 = vrcp.f32 %v5136_v53 }
 0xa51   : > { %2498 = vrot.lane.b32.xlu0 %v2489_v38, %s4287_s7  ;;  %v4076_v41 = vpop.eup %4075 }
 0xa52   : > { %v2179_v43 = vmul.f32 %v4076_v41, %v4989_v40 }
 0xa53   : > { %v2370_v20 = vpop.xlane.xlu0 %2369 }
 0xa54   : > { %4083 = vrcp.f32 %v2370_v20 }
 0xa55   : > { %1569 = vrot.lane.b32.xlu0 %v1558_v5, %s4294_s20  ;;  %4085 = vrcp.f32 %v1120_v28  ;;  %v4078_v9 = vpop.eup %4077 }
 0xa56   : > { %4087 = vrcp.f32 %v5140_v42  ;;  %v2490_v39 = vmul.f32 %v4078_v9, %v5045_v63  ;;  %v2832_v9 = vld [vmem:[#allocation9 + $0x20] sm:$0xff] }
 0xa57   : > { %4089 = vrcp.f32 %v5142_v26 }
 0xa58   : > { %4091 = vrcp.f32 %v5146_v0  ;;  %v5336_v0 = vld [vmem:[#allocation21_spill] sm:$0xff] }
 0xa59   : > { %v4080_v29 = vpop.eup %4079  ;;  %2189 = vrot.lane.b32.xlu0 %v2179_v43, %s4290_s6  ;;  %4093 = vrcp.f32 %v5150_v11  ;;  %v2829_v11 = vld [vmem:[#allocation9 + $0x8] sm:$0xff] }
 0xa5a   : > { %v639_v57 = vmul.f32 %v4080_v29, %v4795_v56  ;;  %v4082_v44 = vpop.eup %4081  ;;  %4095 = vrcp.f32 %v2361_v55  ;;  %v3737_v62 = vpack.c.bf16 %v2829_v11, %v2828_v34  ;;  %v2831_v55 = vld [vmem:[#allocation9 + $0x18] sm:$0xff]  ;;  %v2833_v29 = vld [vmem:[#allocation9 + $0x28] sm:$0xff] }
 0xa5b   : > { %v1244_v40 = vmul.f32 %v4082_v44, %v4811_v4  ;;  %4097 = vrcp.f32 %v1434_v60  ;;  %v3741_v54 = vpack.c.bf16 %v2831_v55, %v2830_v17  ;;  %v2835_v44 = vld [vmem:[#allocation9 + $0x38] sm:$0xff] }
 0xa5c   : > { %643 = vst.msk [vmem:[#allocation3] sm:$0xff] %vm395_vm1, %v639_v57  ;;  %4099 = vrcp.f32 %v1745_v50  ;;  %3738 = vmatprep.subr.bf16.mxu0 %v3737_v62  ;;  %v3745_v57 = vpack.c.bf16 %v2833_v29, %v2832_v9 }
 0xa5d   : > { %2500 = vrot.lane.b32.xlu0 %v2490_v39, %s4287_s7  ;;  %4101 = vrcp.f32 %v1748_v12  ;;  %3740 = vmatpush3.bf16.msra.mxu0 %v3737_v62  ;;  %v2834_v39 = vld [vmem:[#allocation9 + $0x30] sm:$0xff] }
 0xa5e   : > { %v4084_v19 = vpop.eup %4083  ;;  %4103 = vrcp.f32 %v2059_v7  ;;  %3742 = vmatprep.subr.bf16.mxu0 %v3741_v54 }
 0xa5f   : > { %v5179_v58 = vmul.f32 %v4084_v19, %v5043_v25  ;;  %v4086_v53 = vpop.eup %4085  ;;  %v3749_v19 = vpack.c.bf16 %v2835_v44, %v2834_v39 }
 0xa60   : > { %v1245_v56 = vmul.f32 %v4086_v53, %v4809_v3  ;;  %v4088_v63 = vpop.eup %4087 }
 0xa61   : > { %1252 = vrot.lane.b32.xlu1 %v1244_v40, %s4296_s5  ;;  %v1556_v14 = vmul.f32 %v4088_v63, %v4903_v15  ;;  %v4090_v32 = vpop.eup %4089  ;;  %3744 = vmatpush3.bf16.msra.mxu0 %v3741_v54 }
 0xa62   : > { %v935_v4 = vmul.f32 %v4090_v32, %v4807_v2  ;;  %v4092_v25 = vpop.eup %4091  ;;  %v5333_v2 = vld [vmem:[#allocation18_spill] sm:$0xff]  ;;  %3746 = vmatprep.subr.bf16.mxu0 %v3745_v57 }
 0xa63   : > { %v2177_v35 = vmul.f32 %v4092_v25, %v4985_v45  ;;  %v4094_v3 = vpop.eup %4093  ;;  %v5334_v45 = vld [vmem:[#allocation20_spill] sm:$0xff] }
 0xa64   : > { %v1246_v21 = vmul.f32 %v4094_v3, %v5332_v61  ;;  %v4096_v28 = vpop.eup %4095 }
 0xa65   : > { %1254 = vrot.lane.b32.xlu1 %v1245_v56, %s4296_s5  ;;  %v2488_v15 = vmul.f32 %v4096_v28, %v5041_v13  ;;  %v4098_v33 = vpop.eup %4097  ;;  %3748 = vmatpush3.bf16.msra.mxu0 %v3745_v57 }
 0xa66   : > { %v1557_v42 = vmul.f32 %v4098_v33, %v5333_v2  ;;  %v4100_v48 = vpop.eup %4099  ;;  %3750 = vmatprep.subr.bf16.mxu0 %v3749_v19 }
 0xa67   : > { %v1868_v31 = vmul.f32 %v4100_v48, %v5334_v45  ;;  %v4102_v26 = vpop.eup %4101 }
 0xa68   : > { %v1869_v51 = vmul.f32 %v4102_v26, %v5335_v59  ;;  %v4104_v47 = vpop.eup %4103 }
 0xa69   : > { %1565 = vrot.lane.b32.xlu1 %v1556_v14, %s4294_s20  ;;  %v2180_v10 = vmul.f32 %v4104_v47, %v5336_v0  ;;  %3752 = vmatpush3.bf16.msra.mxu0 %v3749_v19 }
 0xa6d   : > { %945 = vrot.lane.b32.xlu1 %v935_v4, %s4298_s24 }
 0xa71   : > { %2185 = vrot.lane.b32.xlu1 %v2177_v35, %s4290_s6 }
 0xa75   : > { %1256 = vrot.lane.b32.xlu1 %v1246_v21, %s4296_s5 }
 0xa79   : > { %2496 = vrot.lane.b32.xlu1 %v2488_v15, %s4287_s7 }
 0xa7d   : > { %1567 = vrot.lane.b32.xlu1 %v1557_v42, %s4294_s20  ;;  %s4209_s20 = sshll.u32 %s4300_s27, 4  ;;  %s4210_s20 = int_to_ptr.vmem [resolvable:$false] %s4209_s20 }
 0xa7e   : > { %s4211_s29 = scalar_lea.vmem %s4210_s20, 1024 }
 0xa81   : > { %1878 = vrot.lane.b32.xlu1 %v1868_v31, %s4291_s9 }
 0xa85   : > { %1880 = vrot.lane.b32.xlu1 %v1869_v51, %s4291_s9 }
 0xa87   : > { %v2675_v13 = vpop.xlane.xlu1 %2674 }
 0xa88   : > { %v2672_v46 = vpop.xlane.xlu0 %2671 }
 0xa89   : > { %2191 = vrot.lane.b32.xlu1 %v2180_v10, %s4290_s6 }
 0xa8b   : > { %v534_v23 = vpop.xlane.xlu1 %533 }
 0xa8c   : > { %4105 = vrcp.f32 %v534_v23  ;;  %v2681_v36 = vpop.xlane.xlu0 %2680 }
 0xa90   : > { %v531_v16 = vpop.xlane.xlu0 %530 }
 0xa91   : > { %4107 = vrcp.f32 %v531_v16 }
 0xa94   : > { %v537_v60 = vpop.xlane.xlu0 %536 }
 0xa95   : > { %4109 = vrcp.f32 %v537_v60 }
 0xa96   : > { %v4106_v27 = vpop.eup %4105  ;;  %4111 = vrcp.f32 %v2675_v13 }
 0xa97   : > { %v641_v24 = vmul.f32 %v4106_v27, %v5337_v6  ;;  %4113 = vrcp.f32 %v2672_v46 }
 0xa98   : > { %4115 = vrcp.f32 %v2681_v36  ;;  %v3163_v36 = vld [vmem:[%s5307_s3] ss:$0 sm:$0xff] }
 0xa99   : > { %645 = vst.msk [vmem:[#allocation3 + $0x10] sm:$0xff] %vm395_vm1, %v641_v24 }
 0xa9b   : > { %v4108_v50 = vpop.eup %4107 }
 0xa9c   : > { %v640_v49 = vmul.f32 %v4108_v50, %v5338_v8 }
 0xa9e   : > { %644 = vst.msk [vmem:[#allocation3 + $0x8] sm:$0xff] %vm395_vm1, %v640_v49  ;;  %v942_v22 = vpop.permute.xlu1 %941 }
 0xa9f   : > { %v4110_v12 = vpop.eup %4109  ;;  %954 = vst.msk [vmem:[#allocation3] sm:$0xff] %vm953_vm4, %v942_v22 }
 0xaa0   : > { %v642_v18 = vmul.f32 %v4110_v12, %v5339_v30  ;;  %v4112_v40 = vpop.eup %4111 }
 0xaa1   : > { %v4114_v56 = vpop.eup %4113 }
 0xaa2   : > { %646 = vst.msk [vmem:[#allocation3 + $0x18] sm:$0xff] %vm395_vm1, %v642_v18  ;;  %v4116_v4 = vpop.eup %4115 }
 0xaa7   : > { %v944_v1 = vpop.permute.xlu0 %943 }
 0xaa8   : > { %955 = vst.msk [vmem:[#allocation3 + $0x8] sm:$0xff] %vm953_vm4, %v944_v1 }
 0xaab   : > { %v1564_v7 = vpop.permute.xlu0 %1563 }
 0xaaf   : > { %v1875_v37 = vpop.permute.xlu0 %1874 }
 0xab3   : > { %v1877_v38 = vpop.permute.xlu0 %1876 }
 0xab7   : > { %v948_v52 = vpop.permute.xlu0 %947 }
 0xab8   : > { %957 = vst.msk [vmem:[#allocation3 + $0x18] sm:$0xff] %vm953_vm4, %v948_v52 }
 0xabb   : > { %v2188_v20 = vpop.permute.xlu0 %2187 }
 0xabf   : > { %v1259_v5 = vpop.permute.xlu0 %1258 }
 0xac0   : > { %1268 = vst.msk [vmem:[#allocation3 + $0x18] sm:$0xff] %vm1264_vm5, %v1259_v5 }
 0xac3   : > { %v2499_v41 = vpop.permute.xlu0 %2498 }
 0xac7   : > { %v1570_v43 = vpop.permute.xlu0 %1569 }
 0xac8   : > { %1579 = vst.msk [vmem:[#allocation3 + $0x18] sm:$0xff] %vm1575_vm6, %v1570_v43 }
 0xacb   : > { %v2190_v31 = vpop.permute.xlu0 %2189 }
 0xacf   : > { %v2501_v51 = vpop.permute.xlu0 %2500 }
 0xad2   : > { %v3535_v53 = vpop.f32.mrb[28].mxu0 }
 0xad3   : > { %v2800_v63 = vmul.f32 %v4112_v40, %v3535_v53  ;;  %v2780_v14 = vpop.f32.mrb[29].mxu0 }
 0xad4   : > { %v2799_v32 = vmul.f32 %v4114_v56, %v2780_v14 }
 0xad5   : > { %2809 = vrot.lane.b32.xlu0 %v2800_v63, %s4286_s23 }
 0xad6   : > { %2807 = vrot.lane.b32.xlu1 %v2799_v32, %s4286_s23  ;;  %v3538_v25 = vpop.f32.mrb[30].mxu0 }
 0xad7   : > { %v2802_v35 = vmul.f32 %v4116_v4, %v3538_v25  ;;  %v2790_v3 = vpop.f32.mrb[31].mxu0 }
 0xada   : > { %2502 = vrot.lane.b32.xlu1 %v5179_v58, %s4287_s7  ;;  %s244_s7 = scalar_lea.vmem [#allocation10], %s3059_s13  ;;  %s5257_s13 = scalar_lea.hbm %s5308_s4, %s3174_s30 }
 0xadb   : > { %s2958_s8 = sshll.u32 %s244_s7, 4  ;;  %s5252_s8 = int_to_ptr.vmem [resolvable:$true] %s2958_s8 }
 0xadc   : > { %s4205_s19 = scalar_lea.vmem %s5252_s8, 512  ;;  %p4212_p5 = scmp.lt.s32.totalorder %s5252_s8, %s4210_s20 }
 0xadd   : > { %v2678_v61 = vpop.xlane.xlu1 %2677  ;;  %p4206_p11 = scmp.ne.s32.totalorder %s5252_s8, %s4205_s19  ;;  %p4213_p9 = scmp.lt.s32.totalorder %s4211_s29, %s4205_s19 }
 0xade   : > { %4117 = vrcp.f32 %v2678_v61  ;;  %2813 = vrot.lane.b32.xlu1 %v2802_v35, %s4286_s23 }
 0xadf   : > { %p4207_p1 = pnand %p4206_p11, %p5340_p0  ;;  %p4214_p12 = por %p4213_p9, %p4212_p5 }
 0xae1   : > { %v1253_v21 = vpop.permute.xlu1 %1252  ;;  %p4208_p3 = pneg %p4207_p1 }
 0xae2   : > { %1265 = vst.msk [vmem:[#allocation3] sm:$0xff] %vm1264_vm5, %v1253_v21 }
 0xae3   : > { %1576 = vst.msk [vmem:[#allocation3] sm:$0xff] %vm1575_vm6, %v1564_v7  ;;  %p4215_p2 = pnand %p4214_p12, %p4208_p3 }
 0xae4   : > { %1887 = vst.msk [vmem:[#allocation3] sm:$0xff] %vm1886_vm7, %v1875_v37 }
 0xae5   : > { %v1255_v28 = vpop.permute.xlu1 %1254 }
 0xae6   : > { %1266 = vst.msk [vmem:[#allocation3 + $0x8] sm:$0xff] %vm1264_vm5, %v1255_v28 }
 0xae8   : > { %v4118_v15 = vpop.eup %4117 }
 0xae9   : > { %v1566_v33 = vpop.permute.xlu1 %1565  ;;  %v2801_v2 = vmul.f32 %v4118_v15, %v2790_v3 }
 0xaea   : > { %1577 = vst.msk [vmem:[#allocation3 + $0x8] sm:$0xff] %vm1575_vm6, %v1566_v33 }
 0xaeb   : > { %1888 = vst.msk [vmem:[#allocation3 + $0x8] sm:$0xff] %vm1886_vm7, %v1877_v38  ;;  %2811 = vrot.lane.b32.xlu0 %v2801_v2, %s4286_s23 }
 0xaec   : > { %2199 = vst.msk [vmem:[#allocation3 + $0x8] sm:$0xff] %vm2197_vm8, %v2188_v20 }
 0xaed   : > { %v946_v58 = vpop.permute.xlu1 %945  ;;  %2510 = vst.msk [vmem:[#allocation3 + $0x8] sm:$0xff] %vm2508_vm9, %v2499_v41 }
 0xaee   : > { %956 = vst.msk [vmem:[#allocation3 + $0x10] sm:$0xff] %vm953_vm4, %v946_v58 }
 0xaf1   : > { %v2186_v42 = vpop.permute.xlu1 %2185 }
 0xaf2   : > { %2198 = vst.msk [vmem:[#allocation3] sm:$0xff] %vm2197_vm8, %v2186_v42 }
 0xaf5   : > { %v1257_v48 = vpop.permute.xlu1 %1256 }
 0xaf6   : > { %1267 = vst.msk [vmem:[#allocation3 + $0x10] sm:$0xff] %vm1264_vm5, %v1257_v48 }
 0xaf9   : > { %v2497_v45 = vpop.permute.xlu1 %2496 }
 0xafa   : > { %2509 = vst.msk [vmem:[#allocation3] sm:$0xff] %vm2508_vm9, %v2497_v45 }
 0xafd   : > { %v1568_v26 = vpop.permute.xlu1 %1567 }
 0xafe   : > { %1578 = vst.msk [vmem:[#allocation3 + $0x10] sm:$0xff] %vm1575_vm6, %v1568_v26 }
 0xb01   : > { %v1879_v59 = vpop.permute.xlu1 %1878 }
 0xb02   : > { %1889 = vst.msk [vmem:[#allocation3 + $0x10] sm:$0xff] %vm1886_vm7, %v1879_v59 }
 0xb03   : > { %2200 = vst.msk [vmem:[#allocation3 + $0x10] sm:$0xff] %vm2197_vm8, %v2190_v31 }
 0xb04   : > { %2511 = vst.msk [vmem:[#allocation3 + $0x10] sm:$0xff] %vm2508_vm9, %v2501_v51 }
 0xb05   : > { %v1881_v47 = vpop.permute.xlu1 %1880 }
 0xb06   : > { %1890 = vst.msk [vmem:[#allocation3 + $0x18] sm:$0xff] %vm1886_vm7, %v1881_v47 }
 0xb09   : > { %v2192_v13 = vpop.permute.xlu1 %2191 }
 0xb0a   : > { %2201 = vst.msk [vmem:[#allocation3 + $0x18] sm:$0xff] %vm2197_vm8, %v2192_v13 }
 0xb47   : > { %v2810_v0 = vpop.permute.xlu0 %2809 }
 0xb48   : > { %2821 = vst.msk [vmem:[#allocation3 + $0x8] sm:$0xff] %vm2819_vm10, %v2810_v0  ;;  %v2808_v10 = vpop.permute.xlu1 %2807 }
 0xb49   : > { %2820 = vst.msk [vmem:[#allocation3] sm:$0xff] %vm2819_vm10, %v2808_v10 }
 0xb4c   : > { %v2503_v46 = vpop.permute.xlu1 %2502 }
 0xb4d   : > { %2512 = vst.msk [vmem:[#allocation3 + $0x18] sm:$0xff] %vm2508_vm9, %v2503_v46 }
 0xb4f   : > { %v2825_v17 = vld [vmem:[#allocation3 + $0x8] sm:$0xff] }
 0xb50   : > { %v2814_v34 = vpop.permute.xlu1 %2813  ;;  %v2824_v11 = vld [vmem:[#allocation3] sm:$0xff] }
 0xb51   : > { %2823 = vst.msk [vmem:[#allocation3 + $0x18] sm:$0xff] %vm2819_vm10, %v2814_v34  ;;  %3555 = vmatprep.mubr.msk.f32.mxu0 %vm265_vm0, %v2824_v11 }
 0xb52   : > { %3556 = vmatmul.mubr.msk.f32.vlgmr.msra.gmra.mrb[32].mxu0 %vm265_vm0, %v2825_v17 }
 0xb58   : > { %v2827_v55 = vld [vmem:[#allocation3 + $0x18] sm:$0xff] }
 0xb5d   : > { %v2812_v23 = vpop.permute.xlu0 %2811 }
 0xb5e   : > { %2822 = vst.msk [vmem:[#allocation3 + $0x10] sm:$0xff] %vm2819_vm10, %v2812_v23 }
 0xb65   : > { %v2826_v62 = vld [vmem:[#allocation3 + $0x10] sm:$0xff] }
 0xb66   : > { %3558 = vmatprep.mubr.msk.f32.mxu0 %vm265_vm0, %v2826_v62 }
 0xb67   : > { %3559 = vmatmul.mubr.msk.f32.gmra.mrb[34].mxu0 %vm265_vm0, %v2827_v55 }
 0xc25   : > { %v3557_v54 = vpop.f32.mrb[32].mxu0 }
 0xc26   : > { %v2927_v16 = vadd.f32 %v3557_v54, %v3163_v36  ;;  %v2921_v60 = vpop.f32.mrb[33].mxu0 }
 0xc27   : > { %v2922_v27 = vadd.f32 %v3163_v36, %v2921_v60 }
 0xc28   : > { %2941 = vst.msk [vmem:[%s244_s7 + $0x8] sm:$0xff] %vm265_vm0, %v2927_v16 }
 0xc29   : > { %2940 = vst.msk [vmem:[%s244_s7] sm:$0xff] %vm265_vm0, %v2922_v27 }
 0xc3a   : > { %v3560_v6 = vpop.f32.mrb[34].mxu0 }
 0xc3b   : > { %v2937_v24 = vadd.f32 %v3560_v6, %v3163_v36  ;;  %v2931_v50 = vpop.f32.mrb[35].mxu0 }
 0xc3c   : > { %v2932_v8 = vadd.f32 %v3163_v36, %v2931_v50 }
 0xc3d   : > { %2943 = vst.msk [vmem:[%s244_s7 + $0x18] sm:$0xff] %vm265_vm0, %v2937_v24 }
 0xc3e   : > { %2942 = vst.msk [vmem:[%s244_s7 + $0x10] sm:$0xff] %vm265_vm0, %v2932_v8 }
 0xc3f   : > { %4218 = shalt.err (!%p4215_p2)
}
 0xc40   : > { %s4219_s5 = scalar_lea.hbm %s5257_s13, 512  ;;  %s4223_s21 = scalar_lea.hbm %s5308_s4, 1024 }
 0xc41   : > { %p4220_p13 = scmp.ne.s32.totalorder %s5257_s13, %s4219_s5  ;;  %p4224_p4 = scmp.lt.u32.totalorder %s5257_s13, %s5308_s4 }
 0xc42   : > { %p4225_p7 = scmp.lt.u32.totalorder %s4223_s21, %s4219_s5  ;;  %p4227_p11 = scmp.lt.u32.totalorder %s4219_s5, %s5257_s13 }
 0xc43   : > { %p4221_p6 = pnand %p4220_p13, %p5340_p0 }
 0xc44   : > { %p4226_p8 = por %p4225_p7, %p4224_p4 }
 0xc45   : > { %p4222_p10 = pneg %p4221_p6 }
 0xc46   : > { %p4228_p1 = por %p4227_p11, %p4226_p8 }
 0xc48   : > { %p4229_p3 = pnand %p4228_p1, %p4222_p10 }
 0xc4a   : > { %4232 = shalt.err (!%p4229_p3)
}
 0xc4b   : > { %s4301_s30 = smov 128  }
 0xc4c   : > { %3763 = dma.vmem_to_hbm [thread:$0]  (%p5340_p0), %s5252_s8, 512, %s5257_s13, %s2945_s28, %s4301_s30, %s4301_s30, %s4298_s24  }
 0xc4d PF: > { %s2973_s6 = sand.u32 1, %s4263_s15   ;;  %p5341_p5 = scmp.ne.s32.totalorder %s5313_s22, 0 }
 0xc4e   : > { %p5342_p9 = scmp.ge.s32.totalorder %s4275_s18, 2  ;;  %s2974_s9 = scalar_lea.sflag [#allocation6], %s2973_s6 }
 0xc50   : > { %p3777_p12 = pnand %p5342_p9, %p5341_p5 }
 0xc52   : > { %4258 = dma.done.wait (!%p3777_p12), %s2974_s9, 512  }
 0xc53   : > { %4260 = vsyncadd (!%p3777_p12), %s2974_s9, 4294966784  ;;  %p18_p2 = scmp.ge.s32.totalorder %s4440_s11, 4   ;;  %s5343_s15 = smov %s4267_s16 }
 0xc54   : > { %s5344_s16 = smov %s4271_s17  ;;  %s5345_s17 = smov %s4449_s14 }
 0xc55   : > { %s5346_s18 = smov %s4440_s11  ;;  %20 = sbr.rel (!%p18_p2) target bundleno = 6 (0x6), region = 89 }
 0xc5c   :  { %2979 = vsyncpa [#allocation5], 1 }
 0xc5d   :  { %2981 = vsyncpa [#allocation5 + $0x1], 1 }
 0xc5e   :  { %2982 = vsyncpa [#allocation8], 1 }
 0xc5f   :  { %2983 = vsyncpa [#allocation6], 1 }
 0xc60   :  { %2985 = vsyncpa [#allocation6 + $0x1], 1 }

</bundles_post_ra>
